<compile_context>
chip_gen: v6e
topology: v6e:2x2x1
jax: 0.10.0
libtpu: 0.0.40
codegen_flags: <defaults>
</compile_context>

<pallas_src>
import functools
import math

import jax
import jax.numpy as jnp
from jax.experimental import pallas as pl
from jax.experimental.pallas import tpu as pltpu

_HALF_LOG_2PI = 0.5 * math.log(2.0 * math.pi)
_OUT_LANES = 128  # lane-dense output slab width


def _round_up(v, m):
    return -(-v // m) * m


# ---------------------------------------------------------------------------
# Weight packing (wrapper side): one lane-padded buffer in the matmul dtype.
# ---------------------------------------------------------------------------
def _weight_entries(XD, ZD, H):
    return [
        ("ew1", (XD, H)),
        ("eb1", (1, H)),
        ("ew2", (H, 2 * ZD)),      # [ew2m | ew2s]   (fused mu / log_std heads)
        ("eb2", (1, 2 * ZD)),
        ("dw1", (ZD, H)),
        ("db1", (1, H)),
        ("dw2", (H, 2 * XD)),      # [dw2m | dw2s]
        ("db2", (1, 2 * XD)),
    ]


def _pack_weights(params, XD, ZD, H, dtype):
    entries = _weight_entries(XD, ZD, H)
    row_align = 8 if jnp.dtype(dtype).itemsize == 4 else 16   # sublane packing
    offsets, off = {}, 0
    for name, (r, _) in entries:
        offsets[name] = off
        off += _round_up(r, row_align)
    rows = _round_up(off, row_align)
    lanes = _round_up(max(c for _, (_, c) in entries), 128)

    tensors = {
        "ew1": params["ew1"],
        "eb1": params["eb1"],
        "ew2": jnp.concatenate([params["ew2m"], params["ew2s"]], axis=-1),
        "eb2": jnp.concatenate([params["eb2m"], params["eb2s"]], axis=-1),
        "dw1": params["dw1"],
        "db1": params["db1"],
        "dw2": jnp.concatenate([params["dw2m"], params["dw2s"]], axis=-1),
        "db2": jnp.concatenate([params["db2m"], params["db2s"]], axis=-1),
    }
    buf = jnp.zeros((rows, lanes), dtype)
    for name, (r, c) in entries:
        buf = buf.at[offsets[name]:offsets[name] + r, :c].set(
            tensors[name].astype(dtype))
    return buf, offsets


# ---------------------------------------------------------------------------
# Kernel: one grid step = `cps` chunks of C graphs (C*N nodes) each, sharing a
# resident block-diagonal adjacency A_blk and the packed weights.
# ---------------------------------------------------------------------------
def _vaca_elbo_kernel(xe_ref, w_ref, a_ref, out_ref, *,
                      w_off, C, N, XD, ZD, H, cps, mm_dtype):
    CR = C * N                                  # rows per chunk (multiple of 8)

    def wblk(name, r, c):
        r0 = w_off[name]
        return w_ref[r0:r0 + r, 0:c]            # static slice -> VMEM load

    a_blk = a_ref[...]                          # (CR, CR), already in mm_dtype
    ew1 = wblk("ew1", XD, H)
    eb1 = wblk("eb1", 1, H)
    ew2 = wblk("ew2", H, 2 * ZD)
    eb2 = wblk("eb2", 1, 2 * ZD)
    dw1 = wblk("dw1", ZD, H)
    db1 = wblk("db1", 1, H)
    dw2 = wblk("dw2", H, 2 * XD)
    db2 = wblk("db2", 1, 2 * XD)

    # Per-graph 0/1 segment-sum matrix (f32) and output lane ids: built once per
    # grid step, reused by every chunk (hoisted out of the loop).
    row = jax.lax.broadcasted_iota(jnp.int32, (C, CR), 0)
    col = jax.lax.broadcasted_iota(jnp.int32, (C, CR), 1)
    seg = ((col >= row * N) & (col < (row + 1) * N)).astype(jnp.float32)
    lane = jax.lax.broadcasted_iota(jnp.int32, (C, _OUT_LANES), 1)

    def mm(a, b):
        return jnp.dot(a.astype(mm_dtype), b.astype(mm_dtype),
                       preferred_element_type=jnp.float32)

    def gnn(feat, w1, b1, w2, b2, dout):
        # 2-layer GCN, fused (mu | log_std) head, plain 2-D MXU matmuls.
        agg = mm(a_blk, feat)                    # (CR, D)
        h = jnp.maximum(mm(agg, w1) + b1, 0.0)   # (CR, H)
        agg2 = mm(a_blk, h)                      # (CR, H)
        o = mm(agg2, w2) + b2                    # (CR, 2*dout)
        return o[:, 0:dout], o[:, dout:2 * dout]

    def chunk(c_idx, carry):
        r0 = pl.multiple_of(c_idx * CR, 8)       # CR is a multiple of 8
        xe = xe_ref[pl.ds(r0, CR), :]            # (CR, XD+ZD) f32 (fused x|eps)
        x = xe[:, 0:XD]
        eps = xe[:, XD:XD + ZD]

        # ---- encoder -> q(z|x), reparameterized sample ----
        mu_q, log_std_q = gnn(x, ew1, eb1, ew2, eb2, ZD)
        std_q = jnp.exp(log_std_q)
        z = mu_q + std_q * eps

        # ---- decoder -> p(x|z) ----
        mu_x, log_std_x = gnn(z, dw1, db1, dw2, db2, XD)

        # ---- elementwise KL(q||N(0,1)) and Gaussian log-likelihood (f32) ----
        kl_elem = 0.5 * (std_q * std_q + mu_q * mu_q - 1.0) - log_std_q   # (CR, ZD)
        diff = (x - mu_x) * jnp.exp(-log_std_x)
        logp_elem = -0.5 * diff * diff - log_std_x - _HALF_LOG_2PI        # (CR, XD)

        # ---- per-graph reductions: ONE fused segment-sum matmul + lane reduces ----
        elem = jnp.concatenate([logp_elem, kl_elem], axis=-1)             # (CR, XD+ZD)
        red = jnp.dot(seg, elem, preferred_element_type=jnp.float32)      # (C, XD+ZD)
        logpx_g = jnp.sum(red[:, 0:XD], axis=-1, keepdims=True)           # (C, 1)
        kl_g = jnp.sum(red[:, XD:XD + ZD], axis=-1, keepdims=True)        # (C, 1)

        g0 = c_idx * C
        if C % 8 == 0:
            g0 = pl.multiple_of(g0, 8)
        # lane-dense slab: lane0 = log_px_z, lane1 = kl_z (beta applied in wrapper)
        out_ref[pl.ds(g0, C), :] = (jnp.where(lane == 0, logpx_g, 0.0)
                                    + jnp.where(lane == 1, kl_g, 0.0))
        return carry

    jax.lax.fori_loop(0, cps, chunk, 0, unroll=True)


# ---------------------------------------------------------------------------
# Tiling / wrapper
# ---------------------------------------------------------------------------
def _default_mxu_edge():
    try:
        kind = jax.devices()[0].device_kind.lower()
    except Exception:
        return 128
    if any(t in kind for t in ("v6", "v7", "tpu7")):
        return 256          # v6e / v7x: 2x256^2 MXU
    return 128              # v5e and older: 128-wide MXU tiles


def _choose_tiling(G, N, mxu_edge, chunk_graphs=None, chunks_per_step=None):
    # graphs-per-chunk granularity so that (C*N) % 8 == 0 (sublane tile).
    step = 8 // math.gcd(N, 8)
    if chunk_graphs is None:
        if N <= mxu_edge:
            C = max(step, ((mxu_edge // N) // step) * step)
        else:
            # TODO(synk): for very wide graphs (N > MXU edge), chunk the A matmul
            # along K to skip all-zero off-diagonal blocks.
            C = step
    else:
        C = int(chunk_graphs)
    assert (C * N) % 8 == 0, "chunk_graphs * N must be a multiple of 8"

    if chunks_per_step is None:
        # Amortize the ~0.35us per-grid-step overhead over many chunks...
        cps = max(1, 4096 // (C * N))
        cps = min(cps, max(1, -(-G // C)))       # don't pad far past the batch
        if G > C:                                # ...but keep >=2 grid steps when
            cps = min(cps, max(1, (G - 1) // C))  # possible (v7x has 2 TensorCores)
    else:
        cps = int(chunks_per_step)
    # output block's sublane dim (graphs per step) must be a multiple of 8
    align = 8 // math.gcd(C, 8)
    cps = _round_up(cps, align)
    return C, cps


def vaca_forward(x, eps, adj, params, beta=1.0, chunk_graphs=None,
                 chunks_per_step=None, use_bf16_matmul=True, mxu_edge=None):
    """Pallas-backed VACA forward (objective='elbo')."""
    G, N, XD = x.shape
    ZD = eps.shape[-1]
    H = params["ew1"].shape[-1]
    mm_dtype = jnp.bfloat16 if use_bf16_matmul else jnp.float32

    if mxu_edge is None:
        mxu_edge = _default_mxu_edge()
    C, cps = _choose_tiling(G, N, mxu_edge, chunk_graphs, chunks_per_step)
    GB = C * cps                                # graphs per grid step
    G_pad = _round_up(G, GB)
    num_tiles = G_pad // GB

    if G_pad != G:  # pad with dummy graphs; their outputs are dropped below
        pad = G_pad - G
        x = jnp.concatenate([x, jnp.zeros((pad, N, XD), x.dtype)], axis=0)
        eps = jnp.concatenate([eps, jnp.zeros((pad, N, ZD), eps.dtype)], axis=0)

    # Fused x|eps input: one DMA per grid step instead of two tiny ones.
    xe = jnp.concatenate([x.reshape(G_pad * N, XD).astype(jnp.float32),
                          eps.reshape(G_pad * N, ZD).astype(jnp.float32)], axis=-1)

    # Weights (pre-cast to matmul dtype) and per-chunk block-diagonal adjacency.
    w_packed, w_off = _pack_weights(params, XD, ZD, H, mm_dtype)
    a_chunk = jnp.kron(jnp.eye(C, dtype=jnp.float32),
                       adj.astype(jnp.float32)).astype(mm_dtype)

    kernel = functools.partial(
        _vaca_elbo_kernel, w_off=w_off, C=C, N=N, XD=XD, ZD=ZD, H=H,
        cps=cps, mm_dtype=mm_dtype)

    itemsize = jnp.dtype(mm_dtype).itemsize
    est = (2 * (GB * N * (XD + ZD) * 4 + GB * _OUT_LANES * 4)
           + 2 * (w_packed.size * itemsize + a_chunk.size * itemsize))
    # Explicit budget (v7x: 64 MiB physical / 32 MiB default scoped VMEM per TC).
    vmem_limit = int(min(max(4 * est, 16 << 20), 64 << 20))

    out = pl.pallas_call(
        kernel,
        grid=(num_tiles,),
        in_specs=[
            pl.BlockSpec((GB * N, XD + ZD), lambda g: (g, 0)),    # fused x|eps tile
            # Resident blocks (constant index maps): weights and adjacency.
            # TODO(synk): pipeline_mode=pl.Buffered(1) would single-buffer these
            # resident params (pure VMEM win on v7x); left off for API stability.
            pl.BlockSpec(w_packed.shape, lambda g: (0, 0)),
            pl.BlockSpec(a_chunk.shape, lambda g: (0, 0)),
        ],
        out_specs=pl.BlockSpec((GB, _OUT_LANES), lambda g: (g, 0)),
        out_shape=jax.ShapeDtypeStruct((G_pad, _OUT_LANES), jnp.float32),
        compiler_params=pltpu.CompilerParams(
            dimension_semantics=("parallel",),
            vmem_limit_bytes=vmem_limit),
    )(xe, w_packed, a_chunk)

    logpx = out[:G, 0]
    kl = out[:G, 1]
    elbo_v = logpx - beta * kl      # beta applied outside the kernel: no recompiles
    return {
        "log_px_z": logpx,
        "kl_z": kl,
        "elbo": elbo_v,
        "objective": elbo_v,
        "loss": -elbo_v,
    }


# ---------------------------------------------------------------------------
# Pure-JAX reference (original unfused math) for correctness checking.
# ---------------------------------------------------------------------------
def _gnn_ref(a, x, w1, b1, w2m, b2m, w2s, b2s):
    hp = jax.lax.Precision.HIGHEST
    agg = jnp.einsum("nm,gmd->gnd", a, x, precision=hp)
    h = jnp.maximum(jnp.einsum("gnd,dh->gnh", agg, w1, precision=hp) + b1, 0.0)
    agg2 = jnp.einsum("nm,gmh->gnh", a, h, precision=hp)
    mu = jnp.einsum("gnh,hk->gnk", agg2, w2m, precision=hp) + b2m
    log_std = jnp.einsum("gnh,hk->gnk", agg2, w2s, precision=hp) + b2s
    return mu, log_std


def vaca_forward_ref(x, eps, adj, params, beta=1.0):
    mu_q, log_std_q = _gnn_ref(
        adj, x, params["ew1"], params["eb1"], params["ew2m"], params["eb2m"],
        params["ew2s"], params["eb2s"])
    std_q = jnp.exp(log_std_q)
    z = mu_q + std_q * eps
    mu_x, log_std_x = _gnn_ref(
        adj, z, params["dw1"], params["db1"], params["dw2m"], params["db2m"],
        params["dw2s"], params["db2s"])
    std_x = jnp.exp(log_std_x)
    kl_elem = 0.5 * (std_q**2 + mu_q**2 - 1.0) - log_std_q
    logp_elem = -0.5 * ((x - mu_x) / std_x) ** 2 - log_std_x - _HALF_LOG_2PI
    G = x.shape[0]
    kl_g = kl_elem.reshape(G, -1).sum(1)
    logpx_g = logp_elem.reshape(G, -1).sum(1)
    elbo_g = logpx_g - beta * kl_g
    return {"log_px_z": logpx_g, "kl_z": kl_g, "elbo": elbo_g,
            "objective": elbo_g, "loss": -elbo_g}


def init_params(key, x_dim, z_dim, hidden):
    ks = jax.random.split(key, 6)
    s = 0.2

    def w(k, shape):
        return (s * jax.random.normal(k, shape)).astype(jnp.float32)

    return {
        # encoder: x_dim -> hidden -> (z_dim mu, z_dim log_std)
        "ew1": w(ks[0], (x_dim, hidden)),
        "eb1": jnp.zeros((1, hidden), jnp.float32),
        "ew2m": w(ks[1], (hidden, z_dim)),
        "eb2m": jnp.zeros((1, z_dim), jnp.float32),
        "ew2s": w(ks[2], (hidden, z_dim)),
        "eb2s": jnp.full((1, z_dim), -1.0, jnp.float32),
        # decoder: z_dim -> hidden -> (x_dim mu, x_dim log_std)
        "dw1": w(ks[3], (z_dim, hidden)),
        "db1": jnp.zeros((1, hidden), jnp.float32),
        "dw2m": w(ks[4], (hidden, x_dim)),
        "db2m": jnp.zeros((1, x_dim), jnp.float32),
        "dw2s": w(ks[5], (hidden, x_dim)),
        "db2s": jnp.full((1, x_dim), -1.0, jnp.float32),
    }


if __name__ == "__main__":
    # Small synthetic "causal graph batch": G graphs, N nodes each.
    G, N, XD, ZD, H = 50, 4, 2, 4, 16
    key = jax.random.PRNGKey(0)
    kx, keps, kp = jax.random.split(key, 3)

    x = jax.random.normal(kx, (G, N, XD), dtype=jnp.float32)
    eps = jax.random.normal(keps, (G, N, ZD), dtype=jnp.float32)

    # Shared causal DAG adjacency with self-loops, row-normalized.
    tri = jnp.tril(jnp.ones((N, N), jnp.float32))
    adj = tri / jnp.sum(tri, axis=1, keepdims=True)

    params = init_params(kp, XD, ZD, H)
    ref = vaca_forward_ref(x, eps, adj, params, beta=1.0)

    # f32 MXU path: 2 grid steps, 4-chunk unrolled inner loop, tight tolerance.
    out = vaca_forward(x, eps, adj, params, beta=1.0, chunk_graphs=8,
                       chunks_per_step=4, use_bf16_matmul=False)
    jax.block_until_ready(out["loss"])
    for k in ("log_px_z", "kl_z", "elbo", "loss"):
        assert out[k].shape == (G,)
        assert jnp.allclose(out[k], ref[k], atol=1e-3, rtol=1e-3), (k, out[k], ref[k])

    # bf16 MXU-operand path (default): explicit-tolerance check vs f32 reference.
    out_bf16 = vaca_forward(x, eps, adj, params, beta=1.0, chunk_graphs=8,
                            chunks_per_step=4)
    jax.block_until_ready(out_bf16["loss"])
    for k in ("log_px_z", "kl_z", "elbo", "loss"):
        assert bool(jnp.all(jnp.isfinite(out_bf16[k])))
        assert jnp.allclose(out_bf16[k], ref[k], rtol=5e-2, atol=1.0), (k,)

    # Auto tiling (MXU-edge-sized chunks, >=2 grid steps when the batch allows);
    # new beta value costs no recompile because beta is applied in the wrapper.
    ref2 = vaca_forward_ref(x, eps, adj, params, beta=0.5)
    out_auto = vaca_forward(x, eps, adj, params, beta=0.5)
    jax.block_until_ready(out_auto["loss"])
    for k in ("log_px_z", "kl_z", "elbo", "loss"):
        assert jnp.allclose(out_auto[k], ref2[k], rtol=5e-2, atol=1.0), (k,)

    # TODO(synk): sample()/reconstruct()/compute_counterfactual()/ATE paths are
    # host-side orchestration (batch_generator, scaler, interventions), not kernels.
    print("KERNEL_OK")
</pallas_src>

<mosaic_0001>
module attributes {stable_mosaic.version = 11 : i64} {
  func.func @_vaca_elbo_kernel(%arg0: i32, %arg1: memref<128x6xf32, #tpu.memory_space<vmem>>, %arg2: memref<80x128xf32, #tpu.memory_space<vmem>>, %arg3: memref<32x32xf32, #tpu.memory_space<vmem>>, %arg4: memref<32x128xf32, #tpu.memory_space<vmem>>) attributes {dimension_semantics = [#tpu.dimension_semantics<parallel>], iteration_bounds = array<i64: 2>, scalar_prefetch = 0 : i64, scratch_operands = 0 : i64, tpu.core_type = #tpu.core_type<tc>, window_params = [{transform_indices = @transform_0, window_bounds = array<i64: 128, 6>}, {pipeline_mode = #tpu.pipeline_mode<synchronous>, transform_indices = @transform_1, window_bounds = array<i64: 80, 128>}, {pipeline_mode = #tpu.pipeline_mode<synchronous>, transform_indices = @transform_2, window_bounds = array<i64: 32, 32>}, {transform_indices = @transform_3, window_bounds = array<i64: 32, 128>}]} {
    %c0 = arith.constant 0 : index
    %c0_0 = arith.constant 0 : index
    %0 = vector.load %arg3[%c0, %c0_0] : memref<32x32xf32, #tpu.memory_space<vmem>>, vector<32x32xf32>
    %c0_1 = arith.constant 0 : index
    %c0_2 = arith.constant 0 : index
    %1 = vector.load %arg2[%c0_1, %c0_2] : memref<80x128xf32, #tpu.memory_space<vmem>>, vector<2x16xf32>
    %c8 = arith.constant 8 : index
    %c0_3 = arith.constant 0 : index
    %2 = vector.load %arg2[%c8, %c0_3] : memref<80x128xf32, #tpu.memory_space<vmem>>, vector<1x16xf32>
    %c16 = arith.constant 16 : index
    %c0_4 = arith.constant 0 : index
    %3 = vector.load %arg2[%c16, %c0_4] : memref<80x128xf32, #tpu.memory_space<vmem>>, vector<16x8xf32>
    %c32 = arith.constant 32 : index
    %c0_5 = arith.constant 0 : index
    %4 = vector.load %arg2[%c32, %c0_5] : memref<80x128xf32, #tpu.memory_space<vmem>>, vector<1x8xf32>
    %c40 = arith.constant 40 : index
    %c0_6 = arith.constant 0 : index
    %5 = vector.load %arg2[%c40, %c0_6] : memref<80x128xf32, #tpu.memory_space<vmem>>, vector<4x16xf32>
    %c48 = arith.constant 48 : index
    %c0_7 = arith.constant 0 : index
    %6 = vector.load %arg2[%c48, %c0_7] : memref<80x128xf32, #tpu.memory_space<vmem>>, vector<1x16xf32>
    %c56 = arith.constant 56 : index
    %c0_8 = arith.constant 0 : index
    %7 = vector.load %arg2[%c56, %c0_8] : memref<80x128xf32, #tpu.memory_space<vmem>>, vector<16x4xf32>
    %c72 = arith.constant 72 : index
    %c0_9 = arith.constant 0 : index
    %8 = vector.load %arg2[%c72, %c0_9] : memref<80x128xf32, #tpu.memory_space<vmem>>, vector<1x4xf32>
    %9 = tpu.iota {dimensions = array<i32: 0>} : vector<8x32xi32>
    %10 = tpu.iota {dimensions = array<i32: 1>} : vector<8x32xi32>
    %c4_i32 = arith.constant 4 : i32
    %11 = vector.broadcast %c4_i32 : i32 to vector<8x32xi32>
    %12 = arith.muli %9, %11 : vector<8x32xi32>
    %13 = arith.cmpi sge, %10, %12 : vector<8x32xi32>
    %c1_i32 = arith.constant 1 : i32
    %14 = vector.broadcast %c1_i32 : i32 to vector<8x32xi32>
    %15 = arith.addi %9, %14 : vector<8x32xi32>
    %c4_i32_10 = arith.constant 4 : i32
    %16 = vector.broadcast %c4_i32_10 : i32 to vector<8x32xi32>
    %17 = arith.muli %15, %16 : vector<8x32xi32>
    %18 = arith.cmpi slt, %10, %17 : vector<8x32xi32>
    %19 = arith.andi %13, %18 : vector<8x32xi1>
    %20 = arith.extui %19 : vector<8x32xi1> to vector<8x32xi32>
    %21 = arith.sitofp %20 : vector<8x32xi32> to vector<8x32xf32>
    %22 = tpu.iota {dimensions = array<i32: 1>} : vector<8x128xi32>
    %c0_i32 = arith.constant 0 : i32
    %c32_i32 = arith.constant 32 : i32
    %23 = arith.muli %c0_i32, %c32_i32 : i32
    %24 = tpu.assume_multiple %23, 8 : i32
    %25 = arith.index_cast %24 : i32 to index
    %c0_11 = arith.constant 0 : index
    %26 = vector.load %arg1[%25, %c0_11] : memref<128x6xf32, #tpu.memory_space<vmem>>, vector<32x6xf32>
    %27 = vector.extract_strided_slice %26 {offsets = [0, 0], sizes = [32, 2], strides = [1, 1]} : vector<32x6xf32> to vector<32x2xf32>
    %28 = vector.extract_strided_slice %26 {offsets = [0, 2], sizes = [32, 4], strides = [1, 1]} : vector<32x6xf32> to vector<32x4xf32>
    %cst = arith.constant dense<0.000000e+00> : vector<32x2xf32>
    %29 = tpu.matmul %0, %27, %cst {dimension_numbers = #tpu.dot_dimension_numbers<[1], [0], [0], [1], [0, 0, 1, 1], [], []>} : vector<32x32xf32>, vector<32x2xf32>, vector<32x2xf32> -> vector<32x2xf32>
    %cst_12 = arith.constant dense<0.000000e+00> : vector<32x16xf32>
    %30 = tpu.matmul %29, %1, %cst_12 {dimension_numbers = #tpu.dot_dimension_numbers<[1], [0], [0], [1], [0, 0, 1, 1], [], []>} : vector<32x2xf32>, vector<2x16xf32>, vector<32x16xf32> -> vector<32x16xf32>
    %31 = vector.broadcast %2 : vector<1x16xf32> to vector<32x16xf32>
    %32 = arith.addf %30, %31 : vector<32x16xf32>
    %cst_13 = arith.constant 0.000000e+00 : f32
    %33 = vector.broadcast %cst_13 : f32 to vector<32x16xf32>
    %34 = arith.maximumf %32, %33 : vector<32x16xf32>
    %cst_14 = arith.constant dense<0.000000e+00> : vector<32x16xf32>
    %35 = tpu.matmul %0, %34, %cst_14 {dimension_numbers = #tpu.dot_dimension_numbers<[1], [0], [0], [1], [0, 0, 1, 1], [], []>} : vector<32x32xf32>, vector<32x16xf32>, vector<32x16xf32> -> vector<32x16xf32>
    %cst_15 = arith.constant dense<0.000000e+00> : vector<32x8xf32>
    %36 = tpu.matmul %35, %3, %cst_15 {dimension_numbers = #tpu.dot_dimension_numbers<[1], [0], [0], [1], [0, 0, 1, 1], [], []>} : vector<32x16xf32>, vector<16x8xf32>, vector<32x8xf32> -> vector<32x8xf32>
    %37 = vector.broadcast %4 : vector<1x8xf32> to vector<32x8xf32>
    %38 = arith.addf %36, %37 : vector<32x8xf32>
    %39 = vector.extract_strided_slice %38 {offsets = [0, 0], sizes = [32, 4], strides = [1, 1]} : vector<32x8xf32> to vector<32x4xf32>
    %40 = vector.extract_strided_slice %38 {offsets = [0, 4], sizes = [32, 4], strides = [1, 1]} : vector<32x8xf32> to vector<32x4xf32>
    %41 = math.exp %40 : vector<32x4xf32>
    %42 = arith.mulf %41, %28 : vector<32x4xf32>
    %43 = arith.addf %39, %42 : vector<32x4xf32>
    %cst_16 = arith.constant dense<0.000000e+00> : vector<32x4xf32>
    %44 = tpu.matmul %0, %43, %cst_16 {dimension_numbers = #tpu.dot_dimension_numbers<[1], [0], [0], [1], [0, 0, 1, 1], [], []>} : vector<32x32xf32>, vector<32x4xf32>, vector<32x4xf32> -> vector<32x4xf32>
    %cst_17 = arith.constant dense<0.000000e+00> : vector<32x16xf32>
    %45 = tpu.matmul %44, %5, %cst_17 {dimension_numbers = #tpu.dot_dimension_numbers<[1], [0], [0], [1], [0, 0, 1, 1], [], []>} : vector<32x4xf32>, vector<4x16xf32>, vector<32x16xf32> -> vector<32x16xf32>
    %46 = vector.broadcast %6 : vector<1x16xf32> to vector<32x16xf32>
    %47 = arith.addf %45, %46 : vector<32x16xf32>
    %cst_18 = arith.constant 0.000000e+00 : f32
    %48 = vector.broadcast %cst_18 : f32 to vector<32x16xf32>
    %49 = arith.maximumf %47, %48 : vector<32x16xf32>
    %cst_19 = arith.constant dense<0.000000e+00> : vector<32x16xf32>
    %50 = tpu.matmul %0, %49, %cst_19 {dimension_numbers = #tpu.dot_dimension_numbers<[1], [0], [0], [1], [0, 0, 1, 1], [], []>} : vector<32x32xf32>, vector<32x16xf32>, vector<32x16xf32> -> vector<32x16xf32>
    %cst_20 = arith.constant dense<0.000000e+00> : vector<32x4xf32>
    %51 = tpu.matmul %50, %7, %cst_20 {dimension_numbers = #tpu.dot_dimension_numbers<[1], [0], [0], [1], [0, 0, 1, 1], [], []>} : vector<32x16xf32>, vector<16x4xf32>, vector<32x4xf32> -> vector<32x4xf32>
    %52 = vector.broadcast %8 : vector<1x4xf32> to vector<32x4xf32>
    %53 = arith.addf %51, %52 : vector<32x4xf32>
    %54 = vector.extract_strided_slice %53 {offsets = [0, 0], sizes = [32, 2], strides = [1, 1]} : vector<32x4xf32> to vector<32x2xf32>
    %55 = vector.extract_strided_slice %53 {offsets = [0, 2], sizes = [32, 2], strides = [1, 1]} : vector<32x4xf32> to vector<32x2xf32>
    %56 = arith.mulf %41, %41 : vector<32x4xf32>
    %57 = arith.mulf %39, %39 : vector<32x4xf32>
    %58 = arith.addf %56, %57 : vector<32x4xf32>
    %cst_21 = arith.constant 1.000000e+00 : f32
    %59 = vector.broadcast %cst_21 : f32 to vector<32x4xf32>
    %60 = arith.subf %58, %59 : vector<32x4xf32>
    %cst_22 = arith.constant 5.000000e-01 : f32
    %61 = vector.broadcast %cst_22 : f32 to vector<32x4xf32>
    %62 = arith.mulf %61, %60 : vector<32x4xf32>
    %63 = arith.subf %62, %40 : vector<32x4xf32>
    %64 = arith.subf %27, %54 : vector<32x2xf32>
    %cst_23 = arith.constant 0.000000e+00 : f32
    %65 = vector.broadcast %cst_23 : f32 to vector<32x2xf32>
    %66 = arith.subf %65, %55 : vector<32x2xf32>
    %67 = math.exp %66 : vector<32x2xf32>
    %68 = arith.mulf %64, %67 : vector<32x2xf32>
    %cst_24 = arith.constant -5.000000e-01 : f32
    %69 = vector.broadcast %cst_24 : f32 to vector<32x2xf32>
    %70 = arith.mulf %69, %68 : vector<32x2xf32>
    %71 = arith.mulf %70, %68 : vector<32x2xf32>
    %72 = arith.subf %71, %55 : vector<32x2xf32>
    %cst_25 = arith.constant 0.918938517 : f32
    %73 = vector.broadcast %cst_25 : f32 to vector<32x2xf32>
    %74 = arith.subf %72, %73 : vector<32x2xf32>
    %75 = tpu.concatenate %74, %63 in 1 : vector<32x2xf32>, vector<32x4xf32> -> vector<32x6xf32>
    %cst_26 = arith.constant dense<0.000000e+00> : vector<8x6xf32>
    %76 = tpu.matmul %21, %75, %cst_26 {dimension_numbers = #tpu.dot_dimension_numbers<[1], [0], [0], [1], [0, 0, 1, 1], [], []>} : vector<8x32xf32>, vector<32x6xf32>, vector<8x6xf32> -> vector<8x6xf32>
    %77 = vector.extract_strided_slice %76 {offsets = [0, 0], sizes = [8, 2], strides = [1, 1]} : vector<8x6xf32> to vector<8x2xf32>
    %cst_27 = arith.constant dense<0.000000e+00> : vector<8xf32>
    %78 = vector.multi_reduction <add>, %77, %cst_27 [1] : vector<8x2xf32> to vector<8xf32>
    %79 = vector.shape_cast %78 : vector<8xf32> to vector<8x1xf32>
    %80 = vector.extract_strided_slice %76 {offsets = [0, 2], sizes = [8, 4], strides = [1, 1]} : vector<8x6xf32> to vector<8x4xf32>
    %cst_28 = arith.constant dense<0.000000e+00> : vector<8xf32>
    %81 = vector.multi_reduction <add>, %80, %cst_28 [1] : vector<8x4xf32> to vector<8xf32>
    %82 = vector.shape_cast %81 : vector<8xf32> to vector<8x1xf32>
    %c8_i32 = arith.constant 8 : i32
    %83 = arith.muli %c0_i32, %c8_i32 : i32
    %84 = tpu.assume_multiple %83, 8 : i32
    %c0_i32_29 = arith.constant 0 : i32
    %85 = vector.broadcast %c0_i32_29 : i32 to vector<8x128xi32>
    %86 = arith.cmpi eq, %22, %85 : vector<8x128xi32>
    %cst_30 = arith.constant 0.000000e+00 : f32
    %87 = vector.shape_cast %79 : vector<8x1xf32> to vector<8x1xf32>
    %88 = vector.broadcast %87 : vector<8x1xf32> to vector<8x128xf32>
    %89 = vector.broadcast %cst_30 : f32 to vector<8x128xf32>
    %90 = arith.select %86, %88, %89 : vector<8x128xi1>, vector<8x128xf32>
    %c1_i32_31 = arith.constant 1 : i32
    %91 = vector.broadcast %c1_i32_31 : i32 to vector<8x128xi32>
    %92 = arith.cmpi eq, %22, %91 : vector<8x128xi32>
    %cst_32 = arith.constant 0.000000e+00 : f32
    %93 = vector.shape_cast %82 : vector<8x1xf32> to vector<8x1xf32>
    %94 = vector.broadcast %93 : vector<8x1xf32> to vector<8x128xf32>
    %95 = vector.broadcast %cst_32 : f32 to vector<8x128xf32>
    %96 = arith.select %92, %94, %95 : vector<8x128xi1>, vector<8x128xf32>
    %97 = arith.addf %90, %96 : vector<8x128xf32>
    %98 = arith.index_cast %84 : i32 to index
    %c0_33 = arith.constant 0 : index
    %99 = vector.load %arg4[%98, %c0_33] : memref<32x128xf32, #tpu.memory_space<vmem>>, vector<8x128xf32>
    tpu.vector_store %arg4[%98, %c0_33], %97 {strides = array<i32>} : memref<32x128xf32, #tpu.memory_space<vmem>>, vector<8x128xf32>,
    %c1_i32_34 = arith.constant 1 : i32
    %c32_i32_35 = arith.constant 32 : i32
    %100 = arith.muli %c1_i32_34, %c32_i32_35 : i32
    %101 = tpu.assume_multiple %100, 8 : i32
    %102 = arith.index_cast %101 : i32 to index
    %c0_36 = arith.constant 0 : index
    %103 = vector.load %arg1[%102, %c0_36] : memref<128x6xf32, #tpu.memory_space<vmem>>, vector<32x6xf32>
    %104 = vector.extract_strided_slice %103 {offsets = [0, 0], sizes = [32, 2], strides = [1, 1]} : vector<32x6xf32> to vector<32x2xf32>
    %105 = vector.extract_strided_slice %103 {offsets = [0, 2], sizes = [32, 4], strides = [1, 1]} : vector<32x6xf32> to vector<32x4xf32>
    %cst_37 = arith.constant dense<0.000000e+00> : vector<32x2xf32>
    %106 = tpu.matmul %0, %104, %cst_37 {dimension_numbers = #tpu.dot_dimension_numbers<[1], [0], [0], [1], [0, 0, 1, 1], [], []>} : vector<32x32xf32>, vector<32x2xf32>, vector<32x2xf32> -> vector<32x2xf32>
    %cst_38 = arith.constant dense<0.000000e+00> : vector<32x16xf32>
    %107 = tpu.matmul %106, %1, %cst_38 {dimension_numbers = #tpu.dot_dimension_numbers<[1], [0], [0], [1], [0, 0, 1, 1], [], []>} : vector<32x2xf32>, vector<2x16xf32>, vector<32x16xf32> -> vector<32x16xf32>
    %108 = vector.broadcast %2 : vector<1x16xf32> to vector<32x16xf32>
    %109 = arith.addf %107, %108 : vector<32x16xf32>
    %cst_39 = arith.constant 0.000000e+00 : f32
    %110 = vector.broadcast %cst_39 : f32 to vector<32x16xf32>
    %111 = arith.maximumf %109, %110 : vector<32x16xf32>
    %cst_40 = arith.constant dense<0.000000e+00> : vector<32x16xf32>
    %112 = tpu.matmul %0, %111, %cst_40 {dimension_numbers = #tpu.dot_dimension_numbers<[1], [0], [0], [1], [0, 0, 1, 1], [], []>} : vector<32x32xf32>, vector<32x16xf32>, vector<32x16xf32> -> vector<32x16xf32>
    %cst_41 = arith.constant dense<0.000000e+00> : vector<32x8xf32>
    %113 = tpu.matmul %112, %3, %cst_41 {dimension_numbers = #tpu.dot_dimension_numbers<[1], [0], [0], [1], [0, 0, 1, 1], [], []>} : vector<32x16xf32>, vector<16x8xf32>, vector<32x8xf32> -> vector<32x8xf32>
    %114 = vector.broadcast %4 : vector<1x8xf32> to vector<32x8xf32>
    %115 = arith.addf %113, %114 : vector<32x8xf32>
    %116 = vector.extract_strided_slice %115 {offsets = [0, 0], sizes = [32, 4], strides = [1, 1]} : vector<32x8xf32> to vector<32x4xf32>
    %117 = vector.extract_strided_slice %115 {offsets = [0, 4], sizes = [32, 4], strides = [1, 1]} : vector<32x8xf32> to vector<32x4xf32>
    %118 = math.exp %117 : vector<32x4xf32>
    %119 = arith.mulf %118, %105 : vector<32x4xf32>
    %120 = arith.addf %116, %119 : vector<32x4xf32>
    %cst_42 = arith.constant dense<0.000000e+00> : vector<32x4xf32>
    %121 = tpu.matmul %0, %120, %cst_42 {dimension_numbers = #tpu.dot_dimension_numbers<[1], [0], [0], [1], [0, 0, 1, 1], [], []>} : vector<32x32xf32>, vector<32x4xf32>, vector<32x4xf32> -> vector<32x4xf32>
    %cst_43 = arith.constant dense<0.000000e+00> : vector<32x16xf32>
    %122 = tpu.matmul %121, %5, %cst_43 {dimension_numbers = #tpu.dot_dimension_numbers<[1], [0], [0], [1], [0, 0, 1, 1], [], []>} : vector<32x4xf32>, vector<4x16xf32>, vector<32x16xf32> -> vector<32x16xf32>
    %123 = vector.broadcast %6 : vector<1x16xf32> to vector<32x16xf32>
    %124 = arith.addf %122, %123 : vector<32x16xf32>
    %cst_44 = arith.constant 0.000000e+00 : f32
    %125 = vector.broadcast %cst_44 : f32 to vector<32x16xf32>
    %126 = arith.maximumf %124, %125 : vector<32x16xf32>
    %cst_45 = arith.constant dense<0.000000e+00> : vector<32x16xf32>
    %127 = tpu.matmul %0, %126, %cst_45 {dimension_numbers = #tpu.dot_dimension_numbers<[1], [0], [0], [1], [0, 0, 1, 1], [], []>} : vector<32x32xf32>, vector<32x16xf32>, vector<32x16xf32> -> vector<32x16xf32>
    %cst_46 = arith.constant dense<0.000000e+00> : vector<32x4xf32>
    %128 = tpu.matmul %127, %7, %cst_46 {dimension_numbers = #tpu.dot_dimension_numbers<[1], [0], [0], [1], [0, 0, 1, 1], [], []>} : vector<32x16xf32>, vector<16x4xf32>, vector<32x4xf32> -> vector<32x4xf32>
    %129 = vector.broadcast %8 : vector<1x4xf32> to vector<32x4xf32>
    %130 = arith.addf %128, %129 : vector<32x4xf32>
    %131 = vector.extract_strided_slice %130 {offsets = [0, 0], sizes = [32, 2], strides = [1, 1]} : vector<32x4xf32> to vector<32x2xf32>
    %132 = vector.extract_strided_slice %130 {offsets = [0, 2], sizes = [32, 2], strides = [1, 1]} : vector<32x4xf32> to vector<32x2xf32>
    %133 = arith.mulf %118, %118 : vector<32x4xf32>
    %134 = arith.mulf %116, %116 : vector<32x4xf32>
    %135 = arith.addf %133, %134 : vector<32x4xf32>
    %cst_47 = arith.constant 1.000000e+00 : f32
    %136 = vector.broadcast %cst_47 : f32 to vector<32x4xf32>
    %137 = arith.subf %135, %136 : vector<32x4xf32>
    %cst_48 = arith.constant 5.000000e-01 : f32
    %138 = vector.broadcast %cst_48 : f32 to vector<32x4xf32>
    %139 = arith.mulf %138, %137 : vector<32x4xf32>
    %140 = arith.subf %139, %117 : vector<32x4xf32>
    %141 = arith.subf %104, %131 : vector<32x2xf32>
    %cst_49 = arith.constant 0.000000e+00 : f32
    %142 = vector.broadcast %cst_49 : f32 to vector<32x2xf32>
    %143 = arith.subf %142, %132 : vector<32x2xf32>
    %144 = math.exp %143 : vector<32x2xf32>
    %145 = arith.mulf %141, %144 : vector<32x2xf32>
    %cst_50 = arith.constant -5.000000e-01 : f32
    %146 = vector.broadcast %cst_50 : f32 to vector<32x2xf32>
    %147 = arith.mulf %146, %145 : vector<32x2xf32>
    %148 = arith.mulf %147, %145 : vector<32x2xf32>
    %149 = arith.subf %148, %132 : vector<32x2xf32>
    %cst_51 = arith.constant 0.918938517 : f32
    %150 = vector.broadcast %cst_51 : f32 to vector<32x2xf32>
    %151 = arith.subf %149, %150 : vector<32x2xf32>
    %152 = tpu.concatenate %151, %140 in 1 : vector<32x2xf32>, vector<32x4xf32> -> vector<32x6xf32>
    %cst_52 = arith.constant dense<0.000000e+00> : vector<8x6xf32>
    %153 = tpu.matmul %21, %152, %cst_52 {dimension_numbers = #tpu.dot_dimension_numbers<[1], [0], [0], [1], [0, 0, 1, 1], [], []>} : vector<8x32xf32>, vector<32x6xf32>, vector<8x6xf32> -> vector<8x6xf32>
    %154 = vector.extract_strided_slice %153 {offsets = [0, 0], sizes = [8, 2], strides = [1, 1]} : vector<8x6xf32> to vector<8x2xf32>
    %cst_53 = arith.constant dense<0.000000e+00> : vector<8xf32>
    %155 = vector.multi_reduction <add>, %154, %cst_53 [1] : vector<8x2xf32> to vector<8xf32>
    %156 = vector.shape_cast %155 : vector<8xf32> to vector<8x1xf32>
    %157 = vector.extract_strided_slice %153 {offsets = [0, 2], sizes = [8, 4], strides = [1, 1]} : vector<8x6xf32> to vector<8x4xf32>
    %cst_54 = arith.constant dense<0.000000e+00> : vector<8xf32>
    %158 = vector.multi_reduction <add>, %157, %cst_54 [1] : vector<8x4xf32> to vector<8xf32>
    %159 = vector.shape_cast %158 : vector<8xf32> to vector<8x1xf32>
    %c8_i32_55 = arith.constant 8 : i32
    %160 = arith.muli %c1_i32_34, %c8_i32_55 : i32
    %161 = tpu.assume_multiple %160, 8 : i32
    %c0_i32_56 = arith.constant 0 : i32
    %162 = vector.broadcast %c0_i32_56 : i32 to vector<8x128xi32>
    %163 = arith.cmpi eq, %22, %162 : vector<8x128xi32>
    %cst_57 = arith.constant 0.000000e+00 : f32
    %164 = vector.shape_cast %156 : vector<8x1xf32> to vector<8x1xf32>
    %165 = vector.broadcast %164 : vector<8x1xf32> to vector<8x128xf32>
    %166 = vector.broadcast %cst_57 : f32 to vector<8x128xf32>
    %167 = arith.select %163, %165, %166 : vector<8x128xi1>, vector<8x128xf32>
    %c1_i32_58 = arith.constant 1 : i32
    %168 = vector.broadcast %c1_i32_58 : i32 to vector<8x128xi32>
    %169 = arith.cmpi eq, %22, %168 : vector<8x128xi32>
    %cst_59 = arith.constant 0.000000e+00 : f32
    %170 = vector.shape_cast %159 : vector<8x1xf32> to vector<8x1xf32>
    %171 = vector.broadcast %170 : vector<8x1xf32> to vector<8x128xf32>
    %172 = vector.broadcast %cst_59 : f32 to vector<8x128xf32>
    %173 = arith.select %169, %171, %172 : vector<8x128xi1>, vector<8x128xf32>
    %174 = arith.addf %167, %173 : vector<8x128xf32>
    %175 = arith.index_cast %161 : i32 to index
    %c0_60 = arith.constant 0 : index
    %176 = vector.load %arg4[%175, %c0_60] : memref<32x128xf32, #tpu.memory_space<vmem>>, vector<8x128xf32>
    tpu.vector_store %arg4[%175, %c0_60], %174 {strides = array<i32>} : memref<32x128xf32, #tpu.memory_space<vmem>>, vector<8x128xf32>,
    %c2_i32 = arith.constant 2 : i32
    %c32_i32_61 = arith.constant 32 : i32
    %177 = arith.muli %c2_i32, %c32_i32_61 : i32
    %178 = tpu.assume_multiple %177, 8 : i32
    %179 = arith.index_cast %178 : i32 to index
    %c0_62 = arith.constant 0 : index
    %180 = vector.load %arg1[%179, %c0_62] : memref<128x6xf32, #tpu.memory_space<vmem>>, vector<32x6xf32>
    %181 = vector.extract_strided_slice %180 {offsets = [0, 0], sizes = [32, 2], strides = [1, 1]} : vector<32x6xf32> to vector<32x2xf32>
    %182 = vector.extract_strided_slice %180 {offsets = [0, 2], sizes = [32, 4], strides = [1, 1]} : vector<32x6xf32> to vector<32x4xf32>
    %cst_63 = arith.constant dense<0.000000e+00> : vector<32x2xf32>
    %183 = tpu.matmul %0, %181, %cst_63 {dimension_numbers = #tpu.dot_dimension_numbers<[1], [0], [0], [1], [0, 0, 1, 1], [], []>} : vector<32x32xf32>, vector<32x2xf32>, vector<32x2xf32> -> vector<32x2xf32>
    %cst_64 = arith.constant dense<0.000000e+00> : vector<32x16xf32>
    %184 = tpu.matmul %183, %1, %cst_64 {dimension_numbers = #tpu.dot_dimension_numbers<[1], [0], [0], [1], [0, 0, 1, 1], [], []>} : vector<32x2xf32>, vector<2x16xf32>, vector<32x16xf32> -> vector<32x16xf32>
    %185 = vector.broadcast %2 : vector<1x16xf32> to vector<32x16xf32>
    %186 = arith.addf %184, %185 : vector<32x16xf32>
    %cst_65 = arith.constant 0.000000e+00 : f32
    %187 = vector.broadcast %cst_65 : f32 to vector<32x16xf32>
    %188 = arith.maximumf %186, %187 : vector<32x16xf32>
    %cst_66 = arith.constant dense<0.000000e+00> : vector<32x16xf32>
    %189 = tpu.matmul %0, %188, %cst_66 {dimension_numbers = #tpu.dot_dimension_numbers<[1], [0], [0], [1], [0, 0, 1, 1], [], []>} : vector<32x32xf32>, vector<32x16xf32>, vector<32x16xf32> -> vector<32x16xf32>
    %cst_67 = arith.constant dense<0.000000e+00> : vector<32x8xf32>
    %190 = tpu.matmul %189, %3, %cst_67 {dimension_numbers = #tpu.dot_dimension_numbers<[1], [0], [0], [1], [0, 0, 1, 1], [], []>} : vector<32x16xf32>, vector<16x8xf32>, vector<32x8xf32> -> vector<32x8xf32>
    %191 = vector.broadcast %4 : vector<1x8xf32> to vector<32x8xf32>
    %192 = arith.addf %190, %191 : vector<32x8xf32>
    %193 = vector.extract_strided_slice %192 {offsets = [0, 0], sizes = [32, 4], strides = [1, 1]} : vector<32x8xf32> to vector<32x4xf32>
    %194 = vector.extract_strided_slice %192 {offsets = [0, 4], sizes = [32, 4], strides = [1, 1]} : vector<32x8xf32> to vector<32x4xf32>
    %195 = math.exp %194 : vector<32x4xf32>
    %196 = arith.mulf %195, %182 : vector<32x4xf32>
    %197 = arith.addf %193, %196 : vector<32x4xf32>
    %cst_68 = arith.constant dense<0.000000e+00> : vector<32x4xf32>
    %198 = tpu.matmul %0, %197, %cst_68 {dimension_numbers = #tpu.dot_dimension_numbers<[1], [0], [0], [1], [0, 0, 1, 1], [], []>} : vector<32x32xf32>, vector<32x4xf32>, vector<32x4xf32> -> vector<32x4xf32>
    %cst_69 = arith.constant dense<0.000000e+00> : vector<32x16xf32>
    %199 = tpu.matmul %198, %5, %cst_69 {dimension_numbers = #tpu.dot_dimension_numbers<[1], [0], [0], [1], [0, 0, 1, 1], [], []>} : vector<32x4xf32>, vector<4x16xf32>, vector<32x16xf32> -> vector<32x16xf32>
    %200 = vector.broadcast %6 : vector<1x16xf32> to vector<32x16xf32>
    %201 = arith.addf %199, %200 : vector<32x16xf32>
    %cst_70 = arith.constant 0.000000e+00 : f32
    %202 = vector.broadcast %cst_70 : f32 to vector<32x16xf32>
    %203 = arith.maximumf %201, %202 : vector<32x16xf32>
    %cst_71 = arith.constant dense<0.000000e+00> : vector<32x16xf32>
    %204 = tpu.matmul %0, %203, %cst_71 {dimension_numbers = #tpu.dot_dimension_numbers<[1], [0], [0], [1], [0, 0, 1, 1], [], []>} : vector<32x32xf32>, vector<32x16xf32>, vector<32x16xf32> -> vector<32x16xf32>
    %cst_72 = arith.constant dense<0.000000e+00> : vector<32x4xf32>
    %205 = tpu.matmul %204, %7, %cst_72 {dimension_numbers = #tpu.dot_dimension_numbers<[1], [0], [0], [1], [0, 0, 1, 1], [], []>} : vector<32x16xf32>, vector<16x4xf32>, vector<32x4xf32> -> vector<32x4xf32>
    %206 = vector.broadcast %8 : vector<1x4xf32> to vector<32x4xf32>
    %207 = arith.addf %205, %206 : vector<32x4xf32>
    %208 = vector.extract_strided_slice %207 {offsets = [0, 0], sizes = [32, 2], strides = [1, 1]} : vector<32x4xf32> to vector<32x2xf32>
    %209 = vector.extract_strided_slice %207 {offsets = [0, 2], sizes = [32, 2], strides = [1, 1]} : vector<32x4xf32> to vector<32x2xf32>
    %210 = arith.mulf %195, %195 : vector<32x4xf32>
    %211 = arith.mulf %193, %193 : vector<32x4xf32>
    %212 = arith.addf %210, %211 : vector<32x4xf32>
    %cst_73 = arith.constant 1.000000e+00 : f32
    %213 = vector.broadcast %cst_73 : f32 to vector<32x4xf32>
    %214 = arith.subf %212, %213 : vector<32x4xf32>
    %cst_74 = arith.constant 5.000000e-01 : f32
    %215 = vector.broadcast %cst_74 : f32 to vector<32x4xf32>
    %216 = arith.mulf %215, %214 : vector<32x4xf32>
    %217 = arith.subf %216, %194 : vector<32x4xf32>
    %218 = arith.subf %181, %208 : vector<32x2xf32>
    %cst_75 = arith.constant 0.000000e+00 : f32
    %219 = vector.broadcast %cst_75 : f32 to vector<32x2xf32>
    %220 = arith.subf %219, %209 : vector<32x2xf32>
    %221 = math.exp %220 : vector<32x2xf32>
    %222 = arith.mulf %218, %221 : vector<32x2xf32>
    %cst_76 = arith.constant -5.000000e-01 : f32
    %223 = vector.broadcast %cst_76 : f32 to vector<32x2xf32>
    %224 = arith.mulf %223, %222 : vector<32x2xf32>
    %225 = arith.mulf %224, %222 : vector<32x2xf32>
    %226 = arith.subf %225, %209 : vector<32x2xf32>
    %cst_77 = arith.constant 0.918938517 : f32
    %227 = vector.broadcast %cst_77 : f32 to vector<32x2xf32>
    %228 = arith.subf %226, %227 : vector<32x2xf32>
    %229 = tpu.concatenate %228, %217 in 1 : vector<32x2xf32>, vector<32x4xf32> -> vector<32x6xf32>
    %cst_78 = arith.constant dense<0.000000e+00> : vector<8x6xf32>
    %230 = tpu.matmul %21, %229, %cst_78 {dimension_numbers = #tpu.dot_dimension_numbers<[1], [0], [0], [1], [0, 0, 1, 1], [], []>} : vector<8x32xf32>, vector<32x6xf32>, vector<8x6xf32> -> vector<8x6xf32>
    %231 = vector.extract_strided_slice %230 {offsets = [0, 0], sizes = [8, 2], strides = [1, 1]} : vector<8x6xf32> to vector<8x2xf32>
    %cst_79 = arith.constant dense<0.000000e+00> : vector<8xf32>
    %232 = vector.multi_reduction <add>, %231, %cst_79 [1] : vector<8x2xf32> to vector<8xf32>
    %233 = vector.shape_cast %232 : vector<8xf32> to vector<8x1xf32>
    %234 = vector.extract_strided_slice %230 {offsets = [0, 2], sizes = [8, 4], strides = [1, 1]} : vector<8x6xf32> to vector<8x4xf32>
    %cst_80 = arith.constant dense<0.000000e+00> : vector<8xf32>
    %235 = vector.multi_reduction <add>, %234, %cst_80 [1] : vector<8x4xf32> to vector<8xf32>
    %236 = vector.shape_cast %235 : vector<8xf32> to vector<8x1xf32>
    %c8_i32_81 = arith.constant 8 : i32
    %237 = arith.muli %c2_i32, %c8_i32_81 : i32
    %238 = tpu.assume_multiple %237, 8 : i32
    %c0_i32_82 = arith.constant 0 : i32
    %239 = vector.broadcast %c0_i32_82 : i32 to vector<8x128xi32>
    %240 = arith.cmpi eq, %22, %239 : vector<8x128xi32>
    %cst_83 = arith.constant 0.000000e+00 : f32
    %241 = vector.shape_cast %233 : vector<8x1xf32> to vector<8x1xf32>
    %242 = vector.broadcast %241 : vector<8x1xf32> to vector<8x128xf32>
    %243 = vector.broadcast %cst_83 : f32 to vector<8x128xf32>
    %244 = arith.select %240, %242, %243 : vector<8x128xi1>, vector<8x128xf32>
    %c1_i32_84 = arith.constant 1 : i32
    %245 = vector.broadcast %c1_i32_84 : i32 to vector<8x128xi32>
    %246 = arith.cmpi eq, %22, %245 : vector<8x128xi32>
    %cst_85 = arith.constant 0.000000e+00 : f32
    %247 = vector.shape_cast %236 : vector<8x1xf32> to vector<8x1xf32>
    %248 = vector.broadcast %247 : vector<8x1xf32> to vector<8x128xf32>
    %249 = vector.broadcast %cst_85 : f32 to vector<8x128xf32>
    %250 = arith.select %246, %248, %249 : vector<8x128xi1>, vector<8x128xf32>
    %251 = arith.addf %244, %250 : vector<8x128xf32>
    %252 = arith.index_cast %238 : i32 to index
    %c0_86 = arith.constant 0 : index
    %253 = vector.load %arg4[%252, %c0_86] : memref<32x128xf32, #tpu.memory_space<vmem>>, vector<8x128xf32>
    tpu.vector_store %arg4[%252, %c0_86], %251 {strides = array<i32>} : memref<32x128xf32, #tpu.memory_space<vmem>>, vector<8x128xf32>,
    %c3_i32 = arith.constant 3 : i32
    %c32_i32_87 = arith.constant 32 : i32
    %254 = arith.muli %c3_i32, %c32_i32_87 : i32
    %255 = tpu.assume_multiple %254, 8 : i32
    %256 = arith.index_cast %255 : i32 to index
    %c0_88 = arith.constant 0 : index
    %257 = vector.load %arg1[%256, %c0_88] : memref<128x6xf32, #tpu.memory_space<vmem>>, vector<32x6xf32>
    %258 = vector.extract_strided_slice %257 {offsets = [0, 0], sizes = [32, 2], strides = [1, 1]} : vector<32x6xf32> to vector<32x2xf32>
    %259 = vector.extract_strided_slice %257 {offsets = [0, 2], sizes = [32, 4], strides = [1, 1]} : vector<32x6xf32> to vector<32x4xf32>
    %cst_89 = arith.constant dense<0.000000e+00> : vector<32x2xf32>
    %260 = tpu.matmul %0, %258, %cst_89 {dimension_numbers = #tpu.dot_dimension_numbers<[1], [0], [0], [1], [0, 0, 1, 1], [], []>} : vector<32x32xf32>, vector<32x2xf32>, vector<32x2xf32> -> vector<32x2xf32>
    %cst_90 = arith.constant dense<0.000000e+00> : vector<32x16xf32>
    %261 = tpu.matmul %260, %1, %cst_90 {dimension_numbers = #tpu.dot_dimension_numbers<[1], [0], [0], [1], [0, 0, 1, 1], [], []>} : vector<32x2xf32>, vector<2x16xf32>, vector<32x16xf32> -> vector<32x16xf32>
    %262 = vector.broadcast %2 : vector<1x16xf32> to vector<32x16xf32>
    %263 = arith.addf %261, %262 : vector<32x16xf32>
    %cst_91 = arith.constant 0.000000e+00 : f32
    %264 = vector.broadcast %cst_91 : f32 to vector<32x16xf32>
    %265 = arith.maximumf %263, %264 : vector<32x16xf32>
    %cst_92 = arith.constant dense<0.000000e+00> : vector<32x16xf32>
    %266 = tpu.matmul %0, %265, %cst_92 {dimension_numbers = #tpu.dot_dimension_numbers<[1], [0], [0], [1], [0, 0, 1, 1], [], []>} : vector<32x32xf32>, vector<32x16xf32>, vector<32x16xf32> -> vector<32x16xf32>
    %cst_93 = arith.constant dense<0.000000e+00> : vector<32x8xf32>
    %267 = tpu.matmul %266, %3, %cst_93 {dimension_numbers = #tpu.dot_dimension_numbers<[1], [0], [0], [1], [0, 0, 1, 1], [], []>} : vector<32x16xf32>, vector<16x8xf32>, vector<32x8xf32> -> vector<32x8xf32>
    %268 = vector.broadcast %4 : vector<1x8xf32> to vector<32x8xf32>
    %269 = arith.addf %267, %268 : vector<32x8xf32>
    %270 = vector.extract_strided_slice %269 {offsets = [0, 0], sizes = [32, 4], strides = [1, 1]} : vector<32x8xf32> to vector<32x4xf32>
    %271 = vector.extract_strided_slice %269 {offsets = [0, 4], sizes = [32, 4], strides = [1, 1]} : vector<32x8xf32> to vector<32x4xf32>
    %272 = math.exp %271 : vector<32x4xf32>
    %273 = arith.mulf %272, %259 : vector<32x4xf32>
    %274 = arith.addf %270, %273 : vector<32x4xf32>
    %cst_94 = arith.constant dense<0.000000e+00> : vector<32x4xf32>
    %275 = tpu.matmul %0, %274, %cst_94 {dimension_numbers = #tpu.dot_dimension_numbers<[1], [0], [0], [1], [0, 0, 1, 1], [], []>} : vector<32x32xf32>, vector<32x4xf32>, vector<32x4xf32> -> vector<32x4xf32>
    %cst_95 = arith.constant dense<0.000000e+00> : vector<32x16xf32>
    %276 = tpu.matmul %275, %5, %cst_95 {dimension_numbers = #tpu.dot_dimension_numbers<[1], [0], [0], [1], [0, 0, 1, 1], [], []>} : vector<32x4xf32>, vector<4x16xf32>, vector<32x16xf32> -> vector<32x16xf32>
    %277 = vector.broadcast %6 : vector<1x16xf32> to vector<32x16xf32>
    %278 = arith.addf %276, %277 : vector<32x16xf32>
    %cst_96 = arith.constant 0.000000e+00 : f32
    %279 = vector.broadcast %cst_96 : f32 to vector<32x16xf32>
    %280 = arith.maximumf %278, %279 : vector<32x16xf32>
    %cst_97 = arith.constant dense<0.000000e+00> : vector<32x16xf32>
    %281 = tpu.matmul %0, %280, %cst_97 {dimension_numbers = #tpu.dot_dimension_numbers<[1], [0], [0], [1], [0, 0, 1, 1], [], []>} : vector<32x32xf32>, vector<32x16xf32>, vector<32x16xf32> -> vector<32x16xf32>
    %cst_98 = arith.constant dense<0.000000e+00> : vector<32x4xf32>
    %282 = tpu.matmul %281, %7, %cst_98 {dimension_numbers = #tpu.dot_dimension_numbers<[1], [0], [0], [1], [0, 0, 1, 1], [], []>} : vector<32x16xf32>, vector<16x4xf32>, vector<32x4xf32> -> vector<32x4xf32>
    %283 = vector.broadcast %8 : vector<1x4xf32> to vector<32x4xf32>
    %284 = arith.addf %282, %283 : vector<32x4xf32>
    %285 = vector.extract_strided_slice %284 {offsets = [0, 0], sizes = [32, 2], strides = [1, 1]} : vector<32x4xf32> to vector<32x2xf32>
    %286 = vector.extract_strided_slice %284 {offsets = [0, 2], sizes = [32, 2], strides = [1, 1]} : vector<32x4xf32> to vector<32x2xf32>
    %287 = arith.mulf %272, %272 : vector<32x4xf32>
    %288 = arith.mulf %270, %270 : vector<32x4xf32>
    %289 = arith.addf %287, %288 : vector<32x4xf32>
    %cst_99 = arith.constant 1.000000e+00 : f32
    %290 = vector.broadcast %cst_99 : f32 to vector<32x4xf32>
    %291 = arith.subf %289, %290 : vector<32x4xf32>
    %cst_100 = arith.constant 5.000000e-01 : f32
    %292 = vector.broadcast %cst_100 : f32 to vector<32x4xf32>
    %293 = arith.mulf %292, %291 : vector<32x4xf32>
    %294 = arith.subf %293, %271 : vector<32x4xf32>
    %295 = arith.subf %258, %285 : vector<32x2xf32>
    %cst_101 = arith.constant 0.000000e+00 : f32
    %296 = vector.broadcast %cst_101 : f32 to vector<32x2xf32>
    %297 = arith.subf %296, %286 : vector<32x2xf32>
    %298 = math.exp %297 : vector<32x2xf32>
    %299 = arith.mulf %295, %298 : vector<32x2xf32>
    %cst_102 = arith.constant -5.000000e-01 : f32
    %300 = vector.broadcast %cst_102 : f32 to vector<32x2xf32>
    %301 = arith.mulf %300, %299 : vector<32x2xf32>
    %302 = arith.mulf %301, %299 : vector<32x2xf32>
    %303 = arith.subf %302, %286 : vector<32x2xf32>
    %cst_103 = arith.constant 0.918938517 : f32
    %304 = vector.broadcast %cst_103 : f32 to vector<32x2xf32>
    %305 = arith.subf %303, %304 : vector<32x2xf32>
    %306 = tpu.concatenate %305, %294 in 1 : vector<32x2xf32>, vector<32x4xf32> -> vector<32x6xf32>
    %cst_104 = arith.constant dense<0.000000e+00> : vector<8x6xf32>
    %307 = tpu.matmul %21, %306, %cst_104 {dimension_numbers = #tpu.dot_dimension_numbers<[1], [0], [0], [1], [0, 0, 1, 1], [], []>} : vector<8x32xf32>, vector<32x6xf32>, vector<8x6xf32> -> vector<8x6xf32>
    %308 = vector.extract_strided_slice %307 {offsets = [0, 0], sizes = [8, 2], strides = [1, 1]} : vector<8x6xf32> to vector<8x2xf32>
    %cst_105 = arith.constant dense<0.000000e+00> : vector<8xf32>
    %309 = vector.multi_reduction <add>, %308, %cst_105 [1] : vector<8x2xf32> to vector<8xf32>
    %310 = vector.shape_cast %309 : vector<8xf32> to vector<8x1xf32>
    %311 = vector.extract_strided_slice %307 {offsets = [0, 2], sizes = [8, 4], strides = [1, 1]} : vector<8x6xf32> to vector<8x4xf32>
    %cst_106 = arith.constant dense<0.000000e+00> : vector<8xf32>
    %312 = vector.multi_reduction <add>, %311, %cst_106 [1] : vector<8x4xf32> to vector<8xf32>
    %313 = vector.shape_cast %312 : vector<8xf32> to vector<8x1xf32>
    %c8_i32_107 = arith.constant 8 : i32
    %314 = arith.muli %c3_i32, %c8_i32_107 : i32
    %315 = tpu.assume_multiple %314, 8 : i32
    %c0_i32_108 = arith.constant 0 : i32
    %316 = vector.broadcast %c0_i32_108 : i32 to vector<8x128xi32>
    %317 = arith.cmpi eq, %22, %316 : vector<8x128xi32>
    %cst_109 = arith.constant 0.000000e+00 : f32
    %318 = vector.shape_cast %310 : vector<8x1xf32> to vector<8x1xf32>
    %319 = vector.broadcast %318 : vector<8x1xf32> to vector<8x128xf32>
    %320 = vector.broadcast %cst_109 : f32 to vector<8x128xf32>
    %321 = arith.select %317, %319, %320 : vector<8x128xi1>, vector<8x128xf32>
    %c1_i32_110 = arith.constant 1 : i32
    %322 = vector.broadcast %c1_i32_110 : i32 to vector<8x128xi32>
    %323 = arith.cmpi eq, %22, %322 : vector<8x128xi32>
    %cst_111 = arith.constant 0.000000e+00 : f32
    %324 = vector.shape_cast %313 : vector<8x1xf32> to vector<8x1xf32>
    %325 = vector.broadcast %324 : vector<8x1xf32> to vector<8x128xf32>
    %326 = vector.broadcast %cst_111 : f32 to vector<8x128xf32>
    %327 = arith.select %323, %325, %326 : vector<8x128xi1>, vector<8x128xf32>
    %328 = arith.addf %321, %327 : vector<8x128xf32>
    %329 = arith.index_cast %315 : i32 to index
    %c0_112 = arith.constant 0 : index
    %330 = vector.load %arg4[%329, %c0_112] : memref<32x128xf32, #tpu.memory_space<vmem>>, vector<8x128xf32>
    tpu.vector_store %arg4[%329, %c0_112], %328 {strides = array<i32>} : memref<32x128xf32, #tpu.memory_space<vmem>>, vector<8x128xf32>,
    %c4_i32_113 = arith.constant 4 : i32
    return
  }
  func.func @transform_0(%arg0: i32) -> (i32, i32) {
    %c0_i32 = arith.constant 0 : i32
    %c0_i32_0 = arith.constant 0 : i32
    return %arg0, %c0_i32 : i32, i32
  }
  func.func @transform_1(%arg0: i32) -> (i32, i32) {
    %c0_i32 = arith.constant 0 : i32
    %c0_i32_0 = arith.constant 0 : i32
    %c0_i32_1 = arith.constant 0 : i32
    return %c0_i32, %c0_i32_0 : i32, i32
  }
  func.func @transform_2(%arg0: i32) -> (i32, i32) {
    %c0_i32 = arith.constant 0 : i32
    %c0_i32_0 = arith.constant 0 : i32
    %c0_i32_1 = arith.constant 0 : i32
    return %c0_i32, %c0_i32_0 : i32, i32
  }
  func.func @transform_3(%arg0: i32) -> (i32, i32) {
    %c0_i32 = arith.constant 0 : i32
    %c0_i32_0 = arith.constant 0 : i32
    return %arg0, %c0_i32 : i32, i32
  }
}

</mosaic_0001>

<bundles_post_ra>
// kernel: tpu_custom_call.1
= control target key start
LH: loop header
LB: loop body
LE: loop exit
PB: predicated region body
PF: predicated region fallthrough
CT: control target
= control target key end

     0   :  { %8 = vsyncpa [#allocation3], 0  ;;  %s6557_s0 = inlined_call_operand.vmem [shape: f32[256,6], index: 0, kind: input, shape index: {}]   ;;  %s6558_s1 = inlined_call_operand.vmem [shape: f32[80,128], index: 1, kind: input, shape index: {}]   ;;  %s6559_s2 = inlined_call_operand.vmem [shape: f32[32,32], index: 2, kind: input, shape index: {}]   ;;  %s6560_s3 = inlined_call_operand.hbm [shape: f32[64,128], index: 3, kind: output, shape index: {}]  }
   0x1   :  { %10 = vsyncpa [#allocation3 + $0x1], 0  ;;  %s5394_s12 = smov 0   ;;  %s5396_s13 = smov 0  }
   0x2   :  { %s5398_s14 = smov 0   ;;  %s5400_s15 = smov 0  }
   0x3 LB: > { %s5415_s16 = sadd.s32 4294967295, %s5363_s15   ;;  %s4325_s17 = sadd.s32 4294967294, %s5363_s15   ;;  %s5363_s15 = sphi %s5400_s15, %s6570_s15   ;;  %s5359_s14 = sphi %s5398_s14, %s6569_s14   ;;  %s5355_s13 = sphi %s5396_s13, %s6568_s13   ;;  %s5351_s12 = sphi %s5394_s12, %s6567_s12  }
   0x4   : > { %s5419_s18 = sadd.s32 1, %s5363_s15   ;;  %s91_s19 = sadd.s32 1, %s5359_s14 }
   0x5   : > { %s88_s20 = ssub.s32 %s5363_s15, %s5419_s18  ;;  %p101_p0 = scmp.ne.s32.totalorder %s5359_s14, %s5355_s13 }
   0x6   : > { %p89_p1 = scmp.eq.s32.totalorder %s88_s20, 0  ;;  %p102_p2 = scmp.eq.s32.totalorder %s5415_s16, 1 }
   0x7   : > { %p107_p3 = scmp.ne.s32.totalorder %s5355_s13, %s5351_s12  ;;  %p108_p4 = scmp.eq.s32.totalorder %s4325_s17, 1 }
   0x8   : > { %s5430_s21 = scalar_select %p89_p1, %s5359_s14, %s91_s19  }
   0x9   : > { %p5432_p5 = por %p102_p2, %p101_p0  ;;  %p5436_p6 = por %p108_p4, %p107_p3 }
   0xa   : > { %p4328_p7 = scmp.ge.s32.totalorder %s5363_s15, 1  ;;  %p141_p8 = scmp.lt.s32.totalorder %s5363_s15, 3 }
   0xc   : > { %p142_p9 = pnand %p4328_p7, %p141_p8 }
   0xd   : > { %s4330_s24 = sshll.u32 (!%p142_p9), %s5415_s16, 4  ;;  %s5366_s4 = smov (!%p142_p9), 124  }
   0xe   : > { %145 = sbr.rel (%p142_p9) target bundleno = 7503 (0x1d4f), region = 32  ;;  %p166_p10 = scmp.lt.s32.totalorder (!%p142_p9), %s4330_s24, 31 }
   0xf   : > { %s5367_s7 = smov (!%p142_p9), 4   ;;  %s5368_s25 = smov (!%p142_p9), 126  }
  0x10   : > { %s4529_s28 = sshll.u32 (!%p142_p9), %s5415_s16, 9  ;;  %s5371_s9 = smov (!%p142_p9), [#allocation2]  }
  0x11   : > { %s6512_s6 = scalar_lea.hbm (!%p142_p9), %s6560_s3, %s4529_s28  ;;  %s5307_s10 = sshll.u32 (!%p142_p9), %s5371_s9, 4  ;;  %s5308_s10 = int_to_ptr.vmem [resolvable:$false] %s5307_s10 }
  0x12   : > { %s5309_s11 = scalar_lea.vmem (!%p142_p9), %s5308_s10, 1024 }
  0x13   : > { %v5446_v0 = vld [vmem:[%s6559_s2] sm:$0xff]  ;;  %vm202_vm0 = vcmask 261120   ;;  %s6572_s24 = smov (!%p166_p10, %s4330_s24), 31  ;;  %v5476_v5 = vld [vmem:[%s6559_s2 + $0x8] sm:$0xff]  ;;  %v5482_v6 = vld [vmem:[%s6559_s2 + $0x10] sm:$0xff]  ;;  %vm317_vm1 = vcmask 1041408  }
  0x14   : > { %4774 = vmatprep.mubr.msk.f32.mxu0 %vm202_vm0, %v5446_v0  ;;  %s4331_s27 = sshll.u32 %s6572_s24, 3  ;;  %v5492_v7 = vld [vmem:[%s6559_s2 + $0x18] sm:$0xff]  ;;  %v5499_v8 = vld [vmem:[%s6558_s1] sm:$0x3]  ;;  %vm304_vm2 = vcmask 15360   ;;  %v5538_v27 = vld [vmem:[%s6558_s1 + $0x10] sm:$0xff] }
  0x15   : > { %s5453_s30 = scalar_lea.vmem %s6557_s0, %s4331_s27  ;;  %4780 = vmatprep.subr.msk.mxu1 %vm317_vm1, %v5499_v8  ;;  %v5514_v13 = vld [vmem:[%s6558_s1 + $0x18] sm:$0xff]  ;;  %v5521_v16 = vld [vmem:[%s6558_s1 + $0x8] ss:$0 sm:$0xff]  ;;  %s5365_s27 = smov 2   ;;  %vm499_vm3 = vcmask 130048   ;;  %vm747_vm4 = vcmask 1043456  }
  0x16   : > { %v5456_v1 = vld [vmem:[%s5453_s30 + $0x18] sm:$0xff]  ;;  %v5459_v2 = vld [vmem:[%s5453_s30 + $0x10] sm:$0xff]  ;;  %v5464_v3 = vld [vmem:[%s5453_s30 + $0x8] sm:$0xff]  ;;  %4781 = vmatpush3.msk.msra.mxu1 %vm317_vm1, %v5499_v8  ;;  %vm734_vm5 = vcmask 31744   ;;  %vm5370_vm6 = vmmov 0  }
  0x17   : > { %4766 = vmatprep.subr.mxu0 %v5456_v1  ;;  %v5469_v4 = vld [vmem:[%s5453_s30] sm:$0xff]  ;;  %611 = vrot.lane.b32.xlu1 %v5464_v3, %s5365_s27  ;;  %v5596_v58 = vld [vmem:[%s6558_s1 + $0x28] sm:$0xf] }
  0x18   : > { %4767 = vmatpush3.msra.mxu0 %v5456_v1  ;;  %615 = vrot.lane.b32.xlu0 %v5456_v1, %s5365_s27  ;;  %v5557_v32 = vld [vmem:[%s6558_s1 + $0x20] ss:$0 sm:$0xff] }
  0x19   : > { %4768 = vmatprep.subr.mxu0 %v5459_v2 }
  0x1a   : > { %4769 = vmatpush3.msra.mxu0 %v5459_v2 }
  0x1b   : > { %4770 = vmatprep.subr.mxu0 %v5464_v3  ;;  %609 = vrot.lane.b32.xlu1 %v5469_v4, %s5365_s27 }
  0x1c   : > { %4771 = vmatpush3.msra.mxu0 %v5464_v3  ;;  %613 = vrot.lane.b32.xlu0 %v5459_v2, %s5365_s27 }
  0x1d   : > { %4772 = vmatprep.subr.mxu0 %v5469_v4 }
  0x1e   : > { %4773 = vmatpush3.msra.mxu0 %v5469_v4 }
  0x1f   : > { %4775 = vmatmul.mubr.msk.f32.vlgmr.msra.gmra.mxu0 %vm202_vm0, %v5476_v5  ;;  %4802 = vmatprep.subr.mxu0 %v5514_v13 }
  0x20   : > { %4777 = vmatprep.mubr.msk.f32.mxu0 %vm202_vm0, %v5482_v6  ;;  %4803 = vmatpush3.msra.mxu0 %v5514_v13 }
  0x21   : > { %4804 = vmatprep.subr.mxu0 %v5538_v27 }
  0x22   : > { %4805 = vmatpush3.msra.mxu0 %v5538_v27 }
  0x23   : > { %4778 = vmatmul.mubr.msk.f32.gmra.mxu0 %vm202_vm0, %v5492_v7  ;;  %4826 = vmatprep.subr.msk.mxu0 %vm747_vm4, %v5596_v58 }
  0x89   : > { %v612_v46 = vpop.permute.xlu1 %611 }
  0x8a   : > { %v616_v45 = vpop.permute.xlu0 %615 }
  0x8d   : > { %v610_v54 = vpop.permute.xlu1 %609 }
  0x8e   : > { %v614_v48 = vpop.permute.xlu0 %613 }
  0xdf   : > { %v4776_v9 = vpop.f32.mrf.mxu0 }
  0xe1   : > { %v281_v10 = vpop.f32.mrf.mxu0 }
  0xe2   : > { %4782 = vmatprep.mubr.msk.f32.mxu1 %vm304_vm2, %v281_v10 }
  0xe3   : > { %v4779_v11 = vpop.f32.mrf.mxu0  ;;  %4783 = vmatmul.mubr.msk.f32.vlgmr.msra.gmra.mxu1 %vm304_vm2, %v4776_v9 }
  0xe5   : > { %v291_v12 = vpop.f32.mrf.mxu0 }
  0xe6   : > { %4785 = vmatprep.mubr.msk.f32.mxu1 %vm304_vm2, %v291_v12 }
  0xe7   : > { %4786 = vmatmul.mubr.msk.f32.gmra.mxu1 %vm304_vm2, %v4779_v11 }
  0xe8   : > { %4796 = vmatprep.mubr.msk.f32.mxu1 %vm202_vm0, %v5446_v0 }
 0x1a3   : > { %v4784_v14 = vpop.f32.mrf.mxu1 }
 0x1a4   : > { %v393_v20 = vadd.f32 %v4784_v14, %v5521_v16 }
 0x1a5   : > { %v387_v15 = vpop.f32.mrf.mxu1 }
 0x1a6   : > { %v388_v23 = vadd.f32 %v5521_v16, %v387_v15  ;;  %v407_v25 = vmax.f32 %v393_v20, 0.0 }
 0x1a7   : > { %v4787_v17 = vpop.f32.mrf.mxu1 }
 0x1a8   : > { %v403_v18 = vadd.f32 %v4787_v17, %v5521_v16  ;;  %v406_v26 = vmax.f32 %v388_v23, 0.0 }
 0x1a9   : > { %v397_v19 = vpop.f32.mrf.mxu1 }
 0x1aa   : > { %v409_v21 = vmax.f32 %v403_v18, 0.0  ;;  %v398_v22 = vadd.f32 %v5521_v16, %v397_v19 }
 0x1ac   : > { %v408_v24 = vmax.f32 %v398_v22, 0.0  ;;  %4788 = vmatprep.subr.mxu1 %v409_v21 }
 0x1ad   : > { %4789 = vmatpush3.msra.mxu1 %v409_v21  ;;  %v5631_v21 = vld [vmem:[%s6558_s1 + $0x40] sm:$0xff] }
 0x1ae   : > { %4790 = vmatprep.subr.mxu1 %v408_v24 }
 0x1af   : > { %4791 = vmatpush3.msra.mxu1 %v408_v24  ;;  %v5638_v24 = vld [vmem:[%s6558_s1 + $0x30] ss:$0 sm:$0xff] }
 0x1b0   : > { %4792 = vmatprep.subr.mxu1 %v407_v25 }
 0x1b1   : > { %4793 = vmatpush3.msra.mxu1 %v407_v25 }
 0x1b2   : > { %4794 = vmatprep.subr.mxu1 %v406_v26 }
 0x1b3   : > { %4795 = vmatpush3.msra.mxu1 %v406_v26 }
 0x1b4   : > { %4797 = vmatmul.mubr.msk.f32.vlgmr.msra.gmra.mxu1 %vm202_vm0, %v5476_v5 }
 0x1b5   : > { %4799 = vmatprep.mubr.msk.f32.mxu1 %vm202_vm0, %v5482_v6 }
 0x1b8   : > { %4800 = vmatmul.mubr.msk.f32.gmra.mxu1 %vm202_vm0, %v5492_v7 }
 0x1b9   : > { %4820 = vmatprep.mubr.msk.f32.mxu1 %vm202_vm0, %v5446_v0 }
 0x274   : > { %v4798_v28 = vpop.f32.mrf.mxu1 }
 0x276   : > { %v476_v29 = vpop.f32.mrf.mxu1 }
 0x277   : > { %4806 = vmatprep.mubr.msk.f32.mxu0 %vm499_vm3, %v476_v29 }
 0x278   : > { %v4801_v30 = vpop.f32.mrf.mxu1  ;;  %4807 = vmatmul.mubr.msk.f32.vlgmr.msra.gmra.mxu0 %vm499_vm3, %v4798_v28 }
 0x279   : > { %4827 = vmatpush3.msk.msra.mxu0 %vm747_vm4, %v5596_v58 }
 0x27a   : > { %v486_v31 = vpop.f32.mrf.mxu1  ;;  %4848 = vmatprep.subr.mxu0 %v5631_v21 }
 0x27b   : > { %4809 = vmatprep.mubr.msk.f32.mxu0 %vm499_vm3, %v486_v31 }
 0x27c   : > { %4810 = vmatmul.mubr.msk.f32.gmra.mxu0 %vm499_vm3, %v4801_v30 }
 0x338   : > { %v4808_v33 = vpop.f32.mrf.mxu0 }
 0x339   : > { %v5560_v34 = vadd.f32 %v4808_v33, %v5557_v32 }
 0x33a   : > { %v578_v35 = vpop.f32.mrf.mxu0 }
 0x33b   : > { %v5563_v37 = vadd.f32 %v5557_v32, %v578_v35  ;;  %v599_v39 = vmul.f32 1.442695, %v5560_v34  ;;  %v1031_v60 = vmul.f32 %v5560_v34, %v5560_v34 }
 0x33c   : > { %v4811_v36 = vpop.f32.mrf.mxu0 }
 0x33d   : > { %v5566_v38 = vadd.f32 %v4811_v36, %v5557_v32  ;;  %v597_v43 = vmul.f32 1.442695, %v5563_v37  ;;  %v1030_v61 = vmul.f32 %v5563_v37, %v5563_v37 }
 0x33e   : > { %v588_v40 = vpop.f32.mrf.mxu0 }
 0x33f   : > { %v603_v41 = vmul.f32 1.442695, %v5566_v38  ;;  %v5571_v42 = vadd.f32 %v5557_v32, %v588_v40  ;;  %v1033_v57 = vmul.f32 %v5566_v38, %v5566_v38  ;;  %v5653_v40 = vld [vmem:[%s6558_s1 + $0x38] sm:$0xff] }
 0x341   : > { %5225 = vpow2.f32 %v603_v41  ;;  %v601_v44 = vmul.f32 1.442695, %v5571_v42  ;;  %v1032_v59 = vmul.f32 %v5571_v42, %v5571_v42  ;;  %v5658_v41 = vld [vmem:[%s5453_s30 + $0x38] sm:$0xff] }
 0x342   : > { %5227 = vpow2.f32 %v599_v39 }
 0x343   : > { %5229 = vpow2.f32 %v601_v44 }
 0x344   : > { %5231 = vpow2.f32 %v597_v43 }
 0x34e   : > { %v5575_v47 = vpop.eup %5225 }
 0x34f   : > { %v5577_v49 = vpop.eup %5227  ;;  %v624_v50 = vmul.f32 %v5575_v47, %v616_v45  ;;  %v5663_v45 = vld [vmem:[%s5453_s30 + $0x30] sm:$0xff] }
 0x350   : > { %v5580_v51 = vpop.eup %5229  ;;  %v622_v55 = vmul.f32 %v5577_v49, %v612_v46 }
 0x351   : > { %v623_v52 = vmul.f32 %v5580_v51, %v614_v48  ;;  %635 = vrot.lane.b32.xlu0 %v624_v50, %s5366_s4  ;;  %v5584_v53 = vpop.eup %5231  ;;  %v5668_v48 = vld [vmem:[%s5453_s30 + $0x28] sm:$0xff] }
 0x352   : > { %v621_v56 = vmul.f32 %v5584_v53, %v610_v54  ;;  %v5698_v54 = vld [vmem:[%s6558_s1 + $0x48] ss:$0 sm:$0xff] }
 0x353   : > { %633 = vrot.lane.b32.xlu1 %v623_v52, %s5366_s4  ;;  %v5674_v52 = vld [vmem:[%s5453_s30 + $0x20] sm:$0xff] }
 0x355   : > { %631 = vrot.lane.b32.xlu0 %v622_v55, %s5366_s4 }
 0x357   : > { %629 = vrot.lane.b32.xlu1 %v621_v56, %s5366_s4 }
 0x359   : > { %1044 = vrot.lane.b32.xlu0 %v1033_v57, %s5367_s7 }
 0x35b   : > { %1042 = vrot.lane.b32.xlu1 %v1032_v59, %s5367_s7 }
 0x35d   : > { %1040 = vrot.lane.b32.xlu0 %v1031_v60, %s5367_s7 }
 0x35f   : > { %1038 = vrot.lane.b32.xlu1 %v1030_v61, %s5367_s7 }
 0x3c3   : > { %v636_v62 = vpop.permute.xlu0 %635 }
 0x3c4   : > { %v644_v63 = vadd.f32 %v636_v62, %v5566_v38 }
 0x3c5   : > { %v634_v9 = vpop.permute.xlu1 %633 }
 0x3c6   : > { %v643_v10 = vadd.f32 %v634_v9, %v5571_v42  ;;  %4812 = vmatprep.subr.mxu1 %v644_v63 }
 0x3c7   : > { %4813 = vmatpush3.msra.mxu1 %v644_v63  ;;  %v632_v11 = vpop.permute.xlu0 %631 }
 0x3c8   : > { %v642_v12 = vadd.f32 %v632_v11, %v5560_v34  ;;  %4814 = vmatprep.subr.mxu1 %v643_v10 }
 0x3c9   : > { %4815 = vmatpush3.msra.mxu1 %v643_v10  ;;  %v630_v14 = vpop.permute.xlu1 %629 }
 0x3ca   : > { %v641_v15 = vadd.f32 %v630_v14, %v5563_v37  ;;  %4816 = vmatprep.subr.mxu1 %v642_v12 }
 0x3cb   : > { %4817 = vmatpush3.msra.mxu1 %v642_v12 }
 0x3cc   : > { %4818 = vmatprep.subr.mxu1 %v641_v15 }
 0x3cd   : > { %4819 = vmatpush3.msra.mxu1 %v641_v15 }
 0x3ce   : > { %4821 = vmatmul.mubr.msk.f32.vlgmr.msra.gmra.mxu1 %vm202_vm0, %v5476_v5 }
 0x3cf   : > { %4823 = vmatprep.mubr.msk.f32.mxu1 %vm202_vm0, %v5482_v6 }
 0x3d2   : > { %4824 = vmatmul.mubr.msk.f32.gmra.mxu1 %vm202_vm0, %v5492_v7 }
 0x3d3   : > { %4842 = vmatprep.mubr.msk.f32.mxu1 %vm202_vm0, %v5446_v0 }
 0x48e   : > { %v4822_v17 = vpop.f32.mrf.mxu1 }
 0x490   : > { %v711_v18 = vpop.f32.mrf.mxu1 }
 0x491   : > { %4828 = vmatprep.mubr.msk.f32.mxu0 %vm734_vm5, %v711_v18  ;;  %v1029_v18 = vmul.f32 %v5575_v47, %v5575_v47  ;;  %v1027_v47 = vmul.f32 %v5577_v49, %v5577_v49 }
 0x492   : > { %v4825_v19 = vpop.f32.mrf.mxu1  ;;  %4829 = vmatmul.mubr.msk.f32.vlgmr.msra.gmra.mxu0 %vm734_vm5, %v4822_v17  ;;  %v1045_v17 = vpop.permute.xlu0 %1044 }
 0x493   : > { %4849 = vmatpush3.msra.mxu0 %v5631_v21 }
 0x494   : > { %v721_v20 = vpop.f32.mrf.mxu1  ;;  %4850 = vmatprep.subr.mxu0 %v5653_v40 }
 0x495   : > { %4831 = vmatprep.mubr.msk.f32.mxu0 %vm734_vm5, %v721_v20  ;;  %4851 = vmatpush3.msra.mxu0 %v5653_v40  ;;  %v1043_v20 = vpop.permute.xlu1 %1042 }
 0x496   : > { %4832 = vmatmul.mubr.msk.f32.gmra.mxu0 %vm734_vm5, %v4825_v19  ;;  %4869 = vmatprep.subr.mxu0 %v5658_v41 }
 0x552   : > { %v4830_v22 = vpop.f32.mrf.mxu0 }
 0x553   : > { %v823_v29 = vadd.f32 %v4830_v22, %v5638_v24  ;;  %v1053_v22 = vadd.f32 %v1045_v17, %v1029_v18 }
 0x554   : > { %v817_v23 = vpop.f32.mrf.mxu0 }
 0x555   : > { %v818_v33 = vadd.f32 %v5638_v24, %v817_v23  ;;  %v837_v36 = vmax.f32 %v823_v29, 0.0  ;;  %v1041_v29 = vpop.permute.xlu0 %1040 }
 0x556   : > { %v4833_v25 = vpop.f32.mrf.mxu0 }
 0x557   : > { %v833_v26 = vadd.f32 %v4833_v25, %v5638_v24  ;;  %v836_v39 = vmax.f32 %v818_v33, 0.0  ;;  %v1028_v25 = vmul.f32 %v5580_v51, %v5580_v51  ;;  %v1026_v51 = vmul.f32 %v5584_v53, %v5584_v53 }
 0x558   : > { %v827_v28 = vpop.f32.mrf.mxu0 }
 0x559   : > { %v839_v30 = vmax.f32 %v833_v26, 0.0  ;;  %v828_v31 = vadd.f32 %v5638_v24, %v827_v28  ;;  %v5369_v26 = vmov 0.0  }
 0x55b   : > { %v838_v35 = vmax.f32 %v828_v31, 0.0  ;;  %4834 = vmatprep.subr.mxu1 %v839_v30  ;;  %v1052_v31 = vadd.f32 %v1043_v20, %v1028_v25 }
 0x55c   : > { %4835 = vmatpush3.msra.mxu1 %v839_v30  ;;  %v4374_v30 = vadd.f32 -1.0, %v1053_v22 }
 0x55d   : > { %4836 = vmatprep.subr.mxu1 %v838_v35 }
 0x55e   : > { %4837 = vmatpush3.msra.mxu1 %v838_v35  ;;  %v1039_v35 = vpop.permute.xlu1 %1038 }
 0x55f   : > { %4838 = vmatprep.subr.mxu1 %v837_v36 }
 0x560   : > { %4839 = vmatpush3.msra.mxu1 %v837_v36  ;;  %v1051_v36 = vadd.f32 %v1041_v29, %v1027_v47 }
 0x561   : > { %4840 = vmatprep.subr.mxu1 %v836_v39 }
 0x562   : > { %4841 = vmatpush3.msra.mxu1 %v836_v39  ;;  %v1061_v39 = vmul.f32 0.5, %v4374_v30 }
 0x563   : > { %4843 = vmatmul.mubr.msk.f32.vlgmr.msra.gmra.mxu1 %vm202_vm0, %v5476_v5  ;;  %4858 = vmatprep.subr.mxu1 %v5369_v26 }
 0x564   : > { %4845 = vmatprep.mubr.msk.f32.mxu1 %vm202_vm0, %v5482_v6  ;;  %v1065_v53 = vsub.f32 %v1061_v39, %v5566_v38 }
 0x567   : > { %4846 = vmatmul.mubr.msk.f32.gmra.mxu1 %vm202_vm0, %v5492_v7 }
 0x568   : > { %4866 = vmatprep.mubr.msk.f32.mxu1 %vm5370_vm6, %v5369_v26 }
 0x623   : > { %v4844_v43 = vpop.f32.mrf.mxu1 }
 0x625   : > { %v906_v44 = vpop.f32.mrf.mxu1 }
 0x626   : > { %4852 = vmatprep.mubr.msk.f32.mxu0 %vm499_vm3, %v906_v44  ;;  %v1050_v44 = vadd.f32 %v1039_v35, %v1026_v51 }
 0x627   : > { %v4847_v46 = vpop.f32.mrf.mxu1  ;;  %4853 = vmatmul.mubr.msk.f32.vlgmr.msra.gmra.mxu0 %vm499_vm3, %v4844_v43  ;;  %v4373_v43 = vadd.f32 -1.0, %v1052_v31 }
 0x628   : > { %4870 = vmatpush3.msra.mxu0 %v5658_v41 }
 0x629   : > { %v916_v50 = vpop.f32.mrf.mxu1  ;;  %4871 = vmatprep.subr.mxu0 %v5663_v45  ;;  %v1060_v49 = vmul.f32 0.5, %v4373_v43 }
 0x62a   : > { %4855 = vmatprep.mubr.msk.f32.mxu0 %vm499_vm3, %v916_v50  ;;  %4872 = vmatpush3.msra.mxu0 %v5663_v45  ;;  %v4371_v50 = vadd.f32 -1.0, %v1050_v44 }
 0x62b   : > { %4856 = vmatmul.mubr.msk.f32.gmra.mxu0 %vm499_vm3, %v4847_v46  ;;  %4873 = vmatprep.subr.mxu0 %v5668_v48  ;;  %v4372_v46 = vadd.f32 -1.0, %v1051_v36 }
 0x62c   : > { %4874 = vmatpush3.msra.mxu0 %v5668_v48  ;;  %4877 = vmatprep.mubr.msk.f32.mxu0 %vm202_vm0, %v5446_v0 }
 0x62d   : > { %4875 = vmatprep.subr.mxu0 %v5674_v52 }
 0x62e   : > { %4876 = vmatpush3.msra.mxu0 %v5674_v52 }
 0x62f   : > { %4878 = vmatmul.mubr.msk.f32.vlgmr.msra.gmra.mxu0 %vm202_vm0, %v5476_v5  ;;  %4905 = vmatprep.subr.mxu0 %v5514_v13 }
 0x630   : > { %4880 = vmatprep.mubr.msk.f32.mxu0 %vm202_vm0, %v5482_v6  ;;  %4906 = vmatpush3.msra.mxu0 %v5514_v13 }
 0x631   : > { %4907 = vmatprep.subr.mxu0 %v5538_v27 }
 0x632   : > { %4908 = vmatpush3.msra.mxu0 %v5538_v27 }
 0x633   : > { %4881 = vmatmul.mubr.msk.f32.gmra.mxu0 %vm202_vm0, %v5492_v7  ;;  %4929 = vmatprep.subr.msk.mxu0 %vm747_vm4, %v5596_v58 }
 0x6e7   : > { %v4854_v55 = vpop.f32.mrf.mxu0 }
 0x6e8   : > { %v5701_v56 = vadd.f32 %v4854_v55, %v5698_v54  ;;  %v1059_v55 = vmul.f32 0.5, %v4372_v46 }
 0x6e9   : > { %v1007_v13 = vpop.f32.mrf.mxu0 }
 0x6ea   : > { %v1071_v57 = vsub.f32 0.0, %v5701_v56  ;;  %v5705_v27 = vadd.f32 %v5698_v54, %v1007_v13  ;;  %v1064_v13 = vsub.f32 %v1060_v49, %v5571_v42 }
 0x6eb   : > { %v4857_v59 = vpop.f32.mrf.mxu0 }
 0x6ec   : > { %v1076_v60 = vmul.f32 1.442695, %v1071_v57  ;;  %v1070_v61 = vsub.f32 0.0, %v5705_v27  ;;  %v5709_v62 = vadd.f32 %v4857_v59, %v5698_v54  ;;  %v1058_v57 = vmul.f32 0.5, %v4371_v50 }
 0x6ed   : > { %v1017_v63 = vpop.f32.mrf.mxu0  ;;  %v1063_v59 = vsub.f32 %v1059_v55, %v5560_v34  ;;  %v186_v34 = vlaneseq }
 0x6ee   : > { %5233 = vpow2.f32 %v1076_v60  ;;  %v1074_v9 = vmul.f32 1.442695, %v1070_v61  ;;  %v1073_v10 = vsub.f32 0.0, %v5709_v62  ;;  %v5713_v11 = vadd.f32 %v5698_v54, %v1017_v63 }
 0x6ef   : > { %v1062_v60 = vsub.f32 %v1058_v57, %v5563_v37  ;;  %v1067_v37 = vsub.f32 %v5464_v3, %v5701_v56  ;;  %v1069_v61 = vsub.f32 %v5456_v1, %v5709_v62  ;;  %v5763_v31 = vand.u32 127, %v186_v34  ;;  %v4879_v39 = vpop.f32.mrf.mxu0 }
 0x6f0   : > { %5235 = vpow2.f32 %v1074_v9  ;;  %v1080_v12 = vmul.f32 1.442695, %v1073_v10  ;;  %v1072_v14 = vsub.f32 0.0, %v5713_v11  ;;  %v187_v9 = vshrl.u32 %v186_v34, 7 }
 0x6f1   : > { %v1314_v57 = vpop.f32.mrf.mxu0  ;;  %vm1237_vm10 = vcmp.eq.s32.totalorder %v5763_v31, 0  ;;  %vm1239_vm11 = vcmp.eq.s32.totalorder %v5763_v31, 1 }
 0x6f2   : > { %5237 = vpow2.f32 %v1080_v12  ;;  %v1078_v15 = vmul.f32 1.442695, %v1072_v14  ;;  %v1066_v12 = vsub.f32 %v5469_v4, %v5705_v27  ;;  %v190_v4 = vmul.u32 4, %v187_v9 }
 0x6f4   : > { %5239 = vpow2.f32 %v1078_v15  ;;  %v1068_v15 = vsub.f32 %v5459_v2, %v5713_v11  ;;  %vm5767_vm7 = vcmp.ge.s32.totalorder %v5763_v31, %v190_v4 }
 0x6fb   : > { %v5234_v19 = vpop.eup %5233 }
 0x6fc   : > { %1088 = vrot.lane.b32.xlu0 %v5234_v19, %s5368_s25 }
 0x6fd   : > { %v5236_v23 = vpop.eup %5235 }
 0x6fe   : > { %1086 = vrot.lane.b32.xlu1 %v5236_v23, %s5368_s25  ;;  %v192_v23 = vadd.s32 1, %v187_v9 }
 0x6ff   : > { %v5238_v28 = vpop.eup %5237 }
 0x700   : > { %1092 = vrot.lane.b32.xlu0 %v5238_v28, %s5368_s25 }
 0x701   : > { %v5240_v33 = vpop.eup %5239 }
 0x702   : > { %1090 = vrot.lane.b32.xlu1 %v5240_v33, %s5368_s25 }
 0x704   : > { %1120 = vrot.lane.b32.xlu0 %v5709_v62, %s5368_s25 }
 0x706   : > { %1118 = vrot.lane.b32.xlu1 %v5713_v11, %s5368_s25 }
 0x708   : > { %1116 = vrot.lane.b32.xlu0 %v5701_v56, %s5368_s25 }
 0x70a   : > { %1144 = vrot.lane.b32.xlu1 %v1065_v53, %s5368_s25 }
 0x70c   : > { %1114 = vrot.lane.b32.xlu0 %v5705_v27, %s5368_s25  ;;  %v193_v27 = vmul.u32 4, %v192_v23 }
 0x70e   : > { %1142 = vrot.lane.b32.xlu1 %v1064_v13, %s5368_s25  ;;  %vm5772_vm8 = vcmp.lt.s32.totalorder %v5763_v31, %v193_v27 }
 0x70f   : > { %vm195_vm9 = vmand %vm5767_vm7, %vm5772_vm8 }
 0x710   : > { %1140 = vrot.lane.b32.xlu0 %v1063_v59, %s5368_s25 }
 0x712   : > { %1138 = vrot.lane.b32.xlu1 %v1062_v60, %s5368_s25 }
 0x714   : > { %1634 = vrot.lane.b32.xlu0 %v5658_v41, %s5365_s27 }
 0x716   : > { %1632 = vrot.lane.b32.xlu1 %v5663_v45, %s5365_s27 }
 0x718   : > { %1630 = vrot.lane.b32.xlu0 %v5668_v48, %s5365_s27 }
 0x71a   : > { %1628 = vrot.lane.b32.xlu1 %v5674_v52, %s5365_s27 }
 0x76e   : > { %v1089_v38 = vpop.permute.xlu0 %1088 }
 0x76f   : > { %v1099_v10 = vmul.f32 %v1089_v38, %v1067_v37 }
 0x770   : > { %v1087_v42 = vpop.permute.xlu1 %1086 }
 0x771   : > { %v1098_v18 = vmul.f32 %v1087_v42, %v1066_v12  ;;  %v1103_v3 = vmul.f32 -0.5, %v1099_v10  ;;  %v5785_v42 = vsel %vm195_vm9, 1.0, %v5369_v26 }
 0x772   : > { %v1093_v63 = vpop.permute.xlu0 %1092 }
 0x773   : > { %v1101_v14 = vmul.f32 %v1093_v63, %v1069_v61  ;;  %v1102_v62 = vmul.f32 -0.5, %v1098_v18  ;;  %v1107_v11 = vmul.f32 %v1103_v3, %v1099_v10  ;;  %v4882_v61 = vpop.f32.mrf.mxu0 }
 0x774   : > { %v1091_v17 = vpop.permute.xlu1 %1090 }
 0x775   : > { %v1105_v19 = vmul.f32 -0.5, %v1101_v14  ;;  %v1100_v20 = vmul.f32 %v1091_v17, %v1068_v15  ;;  %v1106_v51 = vmul.f32 %v1102_v62, %v1098_v18  ;;  %v1324_v63 = vpop.f32.mrf.mxu0 }
 0x776   : > { %v1121_v22 = vpop.permute.xlu0 %1120 }
 0x777   : > { %v1104_v56 = vmul.f32 -0.5, %v1100_v20  ;;  %v1109_v25 = vmul.f32 %v1105_v19, %v1101_v14 }
 0x778   : > { %v1119_v1 = vpop.permute.xlu1 %1118 }
 0x779   : > { %v1129_v28 = vsub.f32 %v1109_v25, %v1121_v22  ;;  %v1108_v29 = vmul.f32 %v1104_v56, %v1100_v20 }
 0x77a   : > { %v1117_v30 = vpop.permute.xlu0 %1116 }
 0x77b   : > { %v4378_v47 = vadd.f32 -0.9189385, %v1129_v28  ;;  %v1128_v2 = vsub.f32 %v1108_v29, %v1119_v1  ;;  %v1127_v35 = vsub.f32 %v1107_v11, %v1117_v30 }
 0x77c   : > { %v1145_v33 = vpop.permute.xlu1 %1144 }
 0x77d   : > { %v1153_v36 = vsel %vm304_vm2, %v4378_v47, %v1145_v33  ;;  %v4377_v49 = vadd.f32 -0.9189385, %v1128_v2  ;;  %v4376_v55 = vadd.f32 -0.9189385, %v1127_v35 }
 0x77e   : > { %v1115_v43 = vpop.permute.xlu0 %1114  ;;  %4859 = vmatpush3.msra.mxu1 %v1153_v36 }
 0x77f   : > { %v1126_v50 = vsub.f32 %v1106_v51, %v1115_v43  ;;  %4860 = vmatprep.subr.mxu1 %v5369_v26 }
 0x780   : > { %v1143_v53 = vpop.permute.xlu1 %1142 }
 0x781   : > { %v1152_v13 = vsel %vm304_vm2, %v4377_v49, %v1143_v53  ;;  %v4375_v60 = vadd.f32 -0.9189385, %v1126_v50 }
 0x782   : > { %v1141_v59 = vpop.permute.xlu0 %1140  ;;  %4861 = vmatpush3.msra.mxu1 %v1152_v13 }
 0x783   : > { %v1151_v38 = vsel %vm304_vm2, %v4376_v55, %v1141_v59  ;;  %4862 = vmatprep.subr.mxu1 %v5369_v26 }
 0x784   : > { %4863 = vmatpush3.msra.mxu1 %v1151_v38  ;;  %v1139_v34 = vpop.permute.xlu1 %1138 }
 0x785   : > { %v1150_v37 = vsel %vm304_vm2, %v4375_v60, %v1139_v34  ;;  %4864 = vmatprep.subr.mxu1 %v5369_v26 }
 0x786   : > { %4865 = vmatpush3.msra.mxu1 %v1150_v37  ;;  %v1635_v51 = vpop.permute.xlu0 %1634 }
 0x787   : > { %4867 = vmatmul.mubr.msk.f32.vlgmr.msra.gmra.mxu1 %vm202_vm0, %v5785_v42  ;;  %4883 = vmatprep.subr.msk.mxu1 %vm317_vm1, %v5499_v8 }
 0x788   : > { %4884 = vmatpush3.msk.msra.mxu1 %vm317_vm1, %v5499_v8  ;;  %4885 = vmatprep.mubr.msk.f32.mxu1 %vm304_vm2, %v1314_v57 }
 0x78b   : > { %4886 = vmatmul.mubr.msk.f32.vlgmr.msra.gmra.mxu1 %vm304_vm2, %v4879_v39  ;;  %v1633_v39 = vpop.permute.xlu1 %1632 }
 0x78c   : > { %4888 = vmatprep.mubr.msk.f32.mxu1 %vm304_vm2, %v1324_v63 }
 0x78f   : > { %4889 = vmatmul.mubr.msk.f32.gmra.mxu1 %vm304_vm2, %v4882_v61  ;;  %v1629_v55 = vpop.permute.xlu1 %1628 }
 0x790   : > { %4899 = vmatprep.mubr.msk.f32.mxu1 %vm202_vm0, %v5446_v0 }
 0x847   : > { %v5801_v9 = vpop.f32.mrf.mxu1 }
 0x849   : > { %v4868_v10 = vpop.f32.mrf.mxu1 }
 0x84b   : > { %v4887_v12 = vpop.f32.mrf.mxu1 }
 0x84c   : > { %v1417_v18 = vadd.f32 %v4887_v12, %v5521_v16 }
 0x84d   : > { %v1411_v14 = vpop.f32.mrf.mxu1 }
 0x84e   : > { %v1412_v22 = vadd.f32 %v5521_v16, %v1411_v14  ;;  %v1431_v3 = vmax.f32 %v1417_v18, 0.0 }
 0x84f   : > { %v4890_v15 = vpop.f32.mrf.mxu1 }
 0x850   : > { %v1427_v8 = vadd.f32 %v4890_v15, %v5521_v16  ;;  %v1430_v56 = vmax.f32 %v1412_v22, 0.0 }
 0x851   : > { %v1421_v17 = vpop.f32.mrf.mxu1 }
 0x852   : > { %v1433_v19 = vmax.f32 %v1427_v8, 0.0  ;;  %v1422_v20 = vadd.f32 %v5521_v16, %v1421_v17 }
 0x854   : > { %v1432_v23 = vmax.f32 %v1422_v20, 0.0  ;;  %4891 = vmatprep.subr.mxu1 %v1433_v19 }
 0x855   : > { %4892 = vmatpush3.msra.mxu1 %v1433_v19 }
 0x856   : > { %4893 = vmatprep.subr.mxu1 %v1432_v23 }
 0x857   : > { %4894 = vmatpush3.msra.mxu1 %v1432_v23 }
 0x858   : > { %4895 = vmatprep.subr.mxu1 %v1431_v3 }
 0x859   : > { %4896 = vmatpush3.msra.mxu1 %v1431_v3 }
 0x85a   : > { %4897 = vmatprep.subr.mxu1 %v1430_v56 }
 0x85b   : > { %4898 = vmatpush3.msra.mxu1 %v1430_v56 }
 0x85c   : > { %4900 = vmatmul.mubr.msk.f32.vlgmr.msra.gmra.mxu1 %vm202_vm0, %v5476_v5 }
 0x85d   : > { %4902 = vmatprep.mubr.msk.f32.mxu1 %vm202_vm0, %v5482_v6 }
 0x860   : > { %4903 = vmatmul.mubr.msk.f32.gmra.mxu1 %vm202_vm0, %v5492_v7 }
 0x861   : > { %4923 = vmatprep.mubr.msk.f32.mxu1 %vm202_vm0, %v5446_v0 }
 0x91c   : > { %v4901_v16 = vpop.f32.mrf.mxu1 }
 0x91e   : > { %v1500_v25 = vpop.f32.mrf.mxu1 }
 0x91f   : > { %4909 = vmatprep.mubr.msk.f32.mxu0 %vm499_vm3, %v1500_v25 }
 0x920   : > { %v4904_v1 = vpop.f32.mrf.mxu1  ;;  %4910 = vmatmul.mubr.msk.f32.vlgmr.msra.gmra.mxu0 %vm499_vm3, %v4901_v16 }
 0x921   : > { %4930 = vmatpush3.msk.msra.mxu0 %vm747_vm4, %v5596_v58 }
 0x922   : > { %v1510_v62 = vpop.f32.mrf.mxu1  ;;  %4951 = vmatprep.subr.mxu0 %v5631_v21 }
 0x923   : > { %4912 = vmatprep.mubr.msk.f32.mxu0 %vm499_vm3, %v1510_v62 }
 0x924   : > { %4913 = vmatmul.mubr.msk.f32.gmra.mxu0 %vm499_vm3, %v4904_v1 }
 0x9e0   : > { %v4911_v28 = vpop.f32.mrf.mxu0 }
 0x9e1   : > { %v5823_v29 = vadd.f32 %v4911_v28, %v5557_v32 }
 0x9e2   : > { %v1597_v30 = vpop.f32.mrf.mxu0 }
 0x9e3   : > { %v5826_v27 = vadd.f32 %v5557_v32, %v1597_v30  ;;  %v1618_v58 = vmul.f32 1.442695, %v5823_v29  ;;  %v2037_v38 = vmul.f32 %v5823_v29, %v5823_v29 }
 0x9e4   : > { %v4914_v4 = vpop.f32.mrf.mxu0 }
 0x9e5   : > { %v5829_v47 = vadd.f32 %v4914_v4, %v5557_v32  ;;  %v1616_v35 = vmul.f32 1.442695, %v5826_v27  ;;  %v2036_v34 = vmul.f32 %v5826_v27, %v5826_v27 }
 0x9e6   : > { %v1607_v2 = vpop.f32.mrf.mxu0 }
 0x9e7   : > { %v1622_v11 = vmul.f32 1.442695, %v5829_v47  ;;  %v5834_v33 = vadd.f32 %v5557_v32, %v1607_v2  ;;  %v1631_v32 = vpop.permute.xlu0 %1630  ;;  %v2039_v59 = vmul.f32 %v5829_v47, %v5829_v47  ;;  %v5904_v2 = vld [vmem:[%s5453_s30 + $0x50] sm:$0xff] }
 0x9e9   : > { %5241 = vpow2.f32 %v1622_v11  ;;  %v1620_v36 = vmul.f32 1.442695, %v5834_v33  ;;  %v2038_v60 = vmul.f32 %v5834_v33, %v5834_v33 }
 0x9ea   : > { %5243 = vpow2.f32 %v1618_v58 }
 0x9eb   : > { %5245 = vpow2.f32 %v1620_v36 }
 0x9ec   : > { %5247 = vpow2.f32 %v1616_v35  ;;  %v5909_v35 = vld [vmem:[%s5453_s30 + $0x48] sm:$0xff] }
 0x9f6   : > { %v5838_v43 = vpop.eup %5241 }
 0x9f7   : > { %v5840_v44 = vpop.eup %5243  ;;  %v1643_v46 = vmul.f32 %v5838_v43, %v1635_v51  ;;  %v5915_v51 = vld [vmem:[%s5453_s30 + $0x40] sm:$0xff] }
 0x9f8   : > { %v5843_v49 = vpop.eup %5245  ;;  %v1641_v13 = vmul.f32 %v5840_v44, %v1631_v32 }
 0x9f9   : > { %v1642_v50 = vmul.f32 %v5843_v49, %v1633_v39  ;;  %1654 = vrot.lane.b32.xlu0 %v1643_v46, %s5366_s4  ;;  %v5847_v53 = vpop.eup %5247  ;;  %v5933_v39 = vld [vmem:[%s6559_s2] sm:$0xff] }
 0x9fa   : > { %v1640_v57 = vmul.f32 %v5847_v53, %v1629_v55 }
 0x9fb   : > { %1652 = vrot.lane.b32.xlu1 %v1642_v50, %s5366_s4 }
 0x9fd   : > { %1650 = vrot.lane.b32.xlu0 %v1641_v13, %s5366_s4 }
 0x9ff   : > { %1648 = vrot.lane.b32.xlu1 %v1640_v57, %s5366_s4 }
 0xa01   : > { %2050 = vrot.lane.b32.xlu0 %v2039_v59, %s5367_s7 }
 0xa03   : > { %2048 = vrot.lane.b32.xlu1 %v2038_v60, %s5367_s7 }
 0xa05   : > { %2046 = vrot.lane.b32.xlu0 %v2037_v38, %s5367_s7 }
 0xa07   : > { %2044 = vrot.lane.b32.xlu1 %v2036_v34, %s5367_s7 }
 0xa6b   : > { %v1655_v37 = vpop.permute.xlu0 %1654 }
 0xa6c   : > { %v1663_v61 = vadd.f32 %v1655_v37, %v5829_v47 }
 0xa6d   : > { %v1653_v63 = vpop.permute.xlu1 %1652 }
 0xa6e   : > { %v1662_v10 = vadd.f32 %v1653_v63, %v5834_v33  ;;  %4915 = vmatprep.subr.mxu1 %v1663_v61 }
 0xa6f   : > { %4916 = vmatpush3.msra.mxu1 %v1663_v61  ;;  %v1651_v12 = vpop.permute.xlu0 %1650 }
 0xa70   : > { %v1661_v14 = vadd.f32 %v1651_v12, %v5823_v29  ;;  %4917 = vmatprep.subr.mxu1 %v1662_v10 }
 0xa71   : > { %4918 = vmatpush3.msra.mxu1 %v1662_v10  ;;  %v1649_v15 = vpop.permute.xlu1 %1648  ;;  %v2035_v10 = vmul.f32 %v5838_v43, %v5838_v43 }
 0xa72   : > { %v1660_v8 = vadd.f32 %v1649_v15, %v5826_v27  ;;  %4919 = vmatprep.subr.mxu1 %v1661_v14 }
 0xa73   : > { %4920 = vmatpush3.msra.mxu1 %v1661_v14  ;;  %v2051_v63 = vpop.permute.xlu0 %2050 }
 0xa74   : > { %4921 = vmatprep.subr.mxu1 %v1660_v8  ;;  %v2059_v15 = vadd.f32 %v2051_v63, %v2035_v10 }
 0xa75   : > { %4922 = vmatpush3.msra.mxu1 %v1660_v8  ;;  %v2049_v14 = vpop.permute.xlu1 %2048 }
 0xa76   : > { %4924 = vmatmul.mubr.msk.f32.vlgmr.msra.gmra.mxu1 %vm202_vm0, %v5476_v5 }
 0xa77   : > { %4926 = vmatprep.mubr.msk.f32.mxu1 %vm202_vm0, %v5482_v6 }
 0xa7a   : > { %4927 = vmatmul.mubr.msk.f32.gmra.mxu1 %vm202_vm0, %v5492_v7 }
 0xa7b   : > { %4945 = vmatprep.mubr.msk.f32.mxu1 %vm202_vm0, %v5446_v0 }
 0xb36   : > { %v4925_v17 = vpop.f32.mrf.mxu1 }
 0xb38   : > { %v1730_v18 = vpop.f32.mrf.mxu1 }
 0xb39   : > { %4931 = vmatprep.mubr.msk.f32.mxu0 %vm734_vm5, %v1730_v18  ;;  %v2047_v18 = vpop.permute.xlu0 %2046 }
 0xb3a   : > { %v4928_v19 = vpop.f32.mrf.mxu1  ;;  %4932 = vmatmul.mubr.msk.f32.vlgmr.msra.gmra.mxu0 %vm734_vm5, %v4925_v17 }
 0xb3b   : > { %4952 = vmatpush3.msra.mxu0 %v5631_v21 }
 0xb3c   : > { %v1740_v20 = vpop.f32.mrf.mxu1  ;;  %4953 = vmatprep.subr.mxu0 %v5653_v40 }
 0xb3d   : > { %4934 = vmatprep.mubr.msk.f32.mxu0 %vm734_vm5, %v1740_v20  ;;  %4954 = vmatpush3.msra.mxu0 %v5653_v40 }
 0xb3e   : > { %4935 = vmatmul.mubr.msk.f32.gmra.mxu0 %vm734_vm5, %v4928_v19  ;;  %v4421_v19 = vadd.f32 -1.0, %v2059_v15 }
 0xbfa   : > { %v4933_v22 = vpop.f32.mrf.mxu0 }
 0xbfb   : > { %v1833_v25 = vadd.f32 %v4933_v22, %v5638_v24  ;;  %v2033_v22 = vmul.f32 %v5840_v44, %v5840_v44 }
 0xbfc   : > { %v1827_v23 = vpop.f32.mrf.mxu0 }
 0xbfd   : > { %v1828_v62 = vadd.f32 %v5638_v24, %v1827_v23  ;;  %v1847_v40 = vmax.f32 %v1833_v25, 0.0  ;;  %v2045_v23 = vpop.permute.xlu1 %2044 }
 0xbfe   : > { %v4936_v3 = vpop.f32.mrf.mxu0 }
 0xbff   : > { %v1843_v56 = vadd.f32 %v4936_v3, %v5638_v24  ;;  %v1846_v30 = vmax.f32 %v1828_v62, 0.0  ;;  %v2057_v3 = vadd.f32 %v2047_v18, %v2033_v22 }
 0xc00   : > { %v1837_v16 = vpop.f32.mrf.mxu0 }
 0xc01   : > { %v1849_v1 = vmax.f32 %v1843_v56, 0.0  ;;  %v1838_v21 = vadd.f32 %v5638_v24, %v1837_v16  ;;  %v5899_v24 = vld [vmem:[%s5453_s30 + $0x58] sm:$0xff]  ;;  %v2032_v56 = vmul.f32 %v5847_v53, %v5847_v53 }
 0xc02   : > { %4972 = vmatprep.subr.mxu0 %v5899_v24 }
 0xc03   : > { %v1848_v28 = vmax.f32 %v1838_v21, 0.0  ;;  %4937 = vmatprep.subr.mxu1 %v1849_v1  ;;  %v2056_v25 = vadd.f32 %v2045_v23, %v2032_v56 }
 0xc04   : > { %4938 = vmatpush3.msra.mxu1 %v1849_v1  ;;  %v4419_v1 = vadd.f32 -1.0, %v2057_v3 }
 0xc05   : > { %4939 = vmatprep.subr.mxu1 %v1848_v28  ;;  %v4418_v62 = vadd.f32 -1.0, %v2056_v25  ;;  %v6019_v25 = vld [vmem:[%s6558_s1 + $0x18] sm:$0xff] }
 0xc06   : > { %4940 = vmatpush3.msra.mxu1 %v1848_v28  ;;  %v2065_v53 = vmul.f32 0.5, %v4419_v1  ;;  %v6028_v1 = vld [vmem:[%s6558_s1 + $0x10] sm:$0xff] }
 0xc07   : > { %4941 = vmatprep.subr.mxu1 %v1847_v40 }
 0xc08   : > { %4942 = vmatpush3.msra.mxu1 %v1847_v40  ;;  %v2064_v40 = vmul.f32 0.5, %v4418_v62 }
 0xc09   : > { %4943 = vmatprep.subr.mxu1 %v1846_v30 }
 0xc0a   : > { %4944 = vmatpush3.msra.mxu1 %v1846_v30  ;;  %v2069_v30 = vsub.f32 %v2065_v53, %v5823_v29 }
 0xc0b   : > { %4946 = vmatmul.mubr.msk.f32.vlgmr.msra.gmra.mxu1 %vm202_vm0, %v5476_v5  ;;  %4961 = vmatprep.subr.mxu1 %v5369_v26 }
 0xc0c   : > { %4948 = vmatprep.mubr.msk.f32.mxu1 %vm202_vm0, %v5482_v6 }
 0xc0f   : > { %4949 = vmatmul.mubr.msk.f32.gmra.mxu1 %vm202_vm0, %v5492_v7 }
 0xc10   : > { %4969 = vmatprep.mubr.msk.f32.mxu1 %vm5370_vm6, %v5369_v26 }
 0xccb   : > { %v4947_v4 = vpop.f32.mrf.mxu1 }
 0xccd   : > { %v1916_v58 = vpop.f32.mrf.mxu1 }
 0xcce   : > { %4955 = vmatprep.mubr.msk.f32.mxu0 %vm499_vm3, %v1916_v58 }
 0xccf   : > { %v4950_v11 = vpop.f32.mrf.mxu1  ;;  %4956 = vmatmul.mubr.msk.f32.vlgmr.msra.gmra.mxu0 %vm499_vm3, %v4947_v4 }
 0xcd0   : > { %4973 = vmatpush3.msra.mxu0 %v5899_v24 }
 0xcd1   : > { %v1926_v36 = vpop.f32.mrf.mxu1  ;;  %4974 = vmatprep.subr.mxu0 %v5904_v2 }
 0xcd2   : > { %4958 = vmatprep.mubr.msk.f32.mxu0 %vm499_vm3, %v1926_v36  ;;  %4975 = vmatpush3.msra.mxu0 %v5904_v2 }
 0xcd3   : > { %4959 = vmatmul.mubr.msk.f32.gmra.mxu0 %vm499_vm3, %v4950_v11  ;;  %4976 = vmatprep.subr.mxu0 %v5909_v35 }
 0xcd4   : > { %4977 = vmatpush3.msra.mxu0 %v5909_v35  ;;  %4980 = vmatprep.mubr.msk.f32.mxu0 %vm202_vm0, %v5446_v0 }
 0xcd5   : > { %4978 = vmatprep.subr.mxu0 %v5915_v51 }
 0xcd6   : > { %4979 = vmatpush3.msra.mxu0 %v5915_v51 }
 0xcd7   : > { %4981 = vmatmul.mubr.msk.f32.vlgmr.msra.gmra.mxu0 %vm202_vm0, %v5476_v5 }
 0xcd8   : > { %4983 = vmatprep.mubr.msk.f32.mxu0 %vm202_vm0, %v5482_v6 }
 0xcdb   : > { %4984 = vmatmul.mubr.msk.f32.gmra.mxu0 %vm202_vm0, %v5492_v7 }
 0xcdc   : > { %5002 = vmatprep.mubr.msk.f32.mxu0 %vm202_vm0, %v5933_v39 }
 0xd8f   : > { %v4957_v0 = vpop.f32.mrf.mxu0 }
 0xd90   : > { %v5938_v46 = vadd.f32 %v4957_v0, %v5698_v54 }
 0xd91   : > { %v2013_v32 = vpop.f32.mrf.mxu0 }
 0xd92   : > { %v2077_v5 = vsub.f32 0.0, %v5938_v46  ;;  %v5942_v6 = vadd.f32 %v5698_v54, %v2013_v32 }
 0xd93   : > { %v4960_v50 = vpop.f32.mrf.mxu0 }
 0xd94   : > { %v2082_v7 = vmul.f32 1.442695, %v2077_v5  ;;  %v2076_v55 = vsub.f32 0.0, %v5942_v6  ;;  %v5946_v13 = vadd.f32 %v4960_v50, %v5698_v54  ;;  %v2072_v36 = vsub.f32 %v5674_v52, %v5942_v6 }
 0xd95   : > { %v2023_v57 = vpop.f32.mrf.mxu0 }
 0xd96   : > { %5249 = vpow2.f32 %v2082_v7  ;;  %v2080_v59 = vmul.f32 1.442695, %v2076_v55  ;;  %v2079_v60 = vsub.f32 0.0, %v5946_v13  ;;  %v5950_v38 = vadd.f32 %v5698_v54, %v2023_v57 }
 0xd97   : > { %v2034_v54 = vmul.f32 %v5843_v49, %v5843_v49  ;;  %v2067_v49 = vmul.f32 0.5, %v4421_v19  ;;  %v2075_v4 = vsub.f32 %v5658_v41, %v5946_v13 }
 0xd98   : > { %5251 = vpow2.f32 %v2080_v59  ;;  %v2086_v34 = vmul.f32 1.442695, %v2079_v60  ;;  %v2078_v37 = vsub.f32 0.0, %v5950_v38  ;;  %v2074_v32 = vsub.f32 %v5663_v45, %v5950_v38 }
 0xd99   : > { %v2058_v20 = vadd.f32 %v2049_v14, %v2034_v54  ;;  %v2071_v44 = vsub.f32 %v2067_v49, %v5829_v47  ;;  %v2068_v47 = vsub.f32 %v2064_v40, %v5826_v27  ;;  %v2073_v27 = vsub.f32 %v5668_v48, %v5938_v46  ;;  %v6009_v49 = vld [vmem:[%s6558_s1] sm:$0x3] }
 0xd9a   : > { %5253 = vpow2.f32 %v2086_v34  ;;  %v2084_v61 = vmul.f32 1.442695, %v2078_v37 }
 0xd9b   : > { %v4420_v16 = vadd.f32 -1.0, %v2058_v20 }
 0xd9c   : > { %5255 = vpow2.f32 %v2084_v61 }
 0xd9d   : > { %v2066_v21 = vmul.f32 0.5, %v4420_v16 }
 0xd9f   : > { %v2070_v28 = vsub.f32 %v2066_v21, %v5834_v33 }
 0xda3   : > { %v5250_v12 = vpop.eup %5249 }
 0xda4   : > { %2094 = vrot.lane.b32.xlu0 %v5250_v12, %s5368_s25  ;;  %v4982_v12 = vpop.f32.mrf.mxu0 }
 0xda5   : > { %v5252_v8 = vpop.eup %5251 }
 0xda6   : > { %2092 = vrot.lane.b32.xlu1 %v5252_v8, %s5368_s25  ;;  %v2316_v19 = vpop.f32.mrf.mxu0 }
 0xda7   : > { %v5254_v17 = vpop.eup %5253 }
 0xda8   : > { %2098 = vrot.lane.b32.xlu0 %v5254_v17, %s5368_s25  ;;  %v4985_v56 = vpop.f32.mrf.mxu0 }
 0xda9   : > { %v5256_v43 = vpop.eup %5255 }
 0xdaa   : > { %2096 = vrot.lane.b32.xlu1 %v5256_v43, %s5368_s25  ;;  %v2326_v16 = vpop.f32.mrf.mxu0 }
 0xdac   : > { %2126 = vrot.lane.b32.xlu0 %v5946_v13, %s5368_s25 }
 0xdae   : > { %2124 = vrot.lane.b32.xlu1 %v5950_v38, %s5368_s25 }
 0xdb0   : > { %2122 = vrot.lane.b32.xlu0 %v5938_v46, %s5368_s25 }
 0xdb2   : > { %2150 = vrot.lane.b32.xlu1 %v2071_v44, %s5368_s25  ;;  %v6036_v44 = vld [vmem:[%s6558_s1 + $0x28] sm:$0xf] }
 0xdb4   : > { %2120 = vrot.lane.b32.xlu0 %v5942_v6, %s5368_s25 }
 0xdb6   : > { %2148 = vrot.lane.b32.xlu1 %v2070_v28, %s5368_s25 }
 0xdb8   : > { %2146 = vrot.lane.b32.xlu0 %v2069_v30, %s5368_s25  ;;  %v6045_v30 = vld [vmem:[%s6558_s1 + $0x8] ss:$0 sm:$0xff] }
 0xdba   : > { %2144 = vrot.lane.b32.xlu1 %v2068_v47, %s5368_s25 }
 0xdbc   : > { %2636 = vrot.lane.b32.xlu0 %v5899_v24, %s5365_s27 }
 0xdbe   : > { %2634 = vrot.lane.b32.xlu1 %v5904_v2, %s5365_s27 }
 0xdc0   : > { %2632 = vrot.lane.b32.xlu0 %v5909_v35, %s5365_s27 }
 0xdc2   : > { %2630 = vrot.lane.b32.xlu1 %v5915_v51, %s5365_s27 }
 0xe16   : > { %v2095_v29 = vpop.permute.xlu0 %2094 }
 0xe17   : > { %v2105_v11 = vmul.f32 %v2095_v29, %v2073_v27 }
 0xe18   : > { %v2093_v33 = vpop.permute.xlu1 %2092 }
 0xe19   : > { %v2104_v50 = vmul.f32 %v2093_v33, %v2072_v36  ;;  %v2109_v59 = vmul.f32 -0.5, %v2105_v11 }
 0xe1a   : > { %v2099_v58 = vpop.permute.xlu0 %2098 }
 0xe1b   : > { %v2107_v0 = vmul.f32 %v2099_v58, %v2075_v4  ;;  %v2108_v34 = vmul.f32 -0.5, %v2104_v50  ;;  %v2113_v52 = vmul.f32 %v2109_v59, %v2105_v11 }
 0xe1c   : > { %v2097_v5 = vpop.permute.xlu1 %2096 }
 0xe1d   : > { %v2111_v7 = vmul.f32 -0.5, %v2107_v0  ;;  %v2106_v55 = vmul.f32 %v2097_v5, %v2074_v32  ;;  %v2112_v38 = vmul.f32 %v2108_v34, %v2104_v50  ;;  %v6054_v32 = vld [vmem:[%s6559_s2 + $0x8] sm:$0xff]  ;;  %v6061_v5 = vld [vmem:[%s6559_s2 + $0x10] sm:$0xff]  ;;  %v6068_v50 = vld [vmem:[%s6559_s2 + $0x18] sm:$0xff] }
 0xe1e   : > { %v2127_v57 = vpop.permute.xlu0 %2126 }
 0xe1f   : > { %v2110_v60 = vmul.f32 -0.5, %v2106_v55  ;;  %v2115_v48 = vmul.f32 %v2111_v7, %v2107_v0 }
 0xe20   : > { %v2125_v46 = vpop.permute.xlu1 %2124 }
 0xe21   : > { %v2135_v41 = vsub.f32 %v2115_v48, %v2127_v57  ;;  %v2114_v13 = vmul.f32 %v2110_v60, %v2106_v55  ;;  %v6081_v60 = vld [vmem:[%s6558_s1 + $0x40] sm:$0xff] }
 0xe22   : > { %v2123_v37 = vpop.permute.xlu0 %2122 }
 0xe23   : > { %v4425_v61 = vadd.f32 -0.9189385, %v2135_v41  ;;  %v2134_v63 = vsub.f32 %v2114_v13, %v2125_v46  ;;  %v2133_v10 = vsub.f32 %v2113_v52, %v2123_v37  ;;  %v6089_v46 = vld [vmem:[%s6558_s1 + $0x20] ss:$0 sm:$0xff] }
 0xe24   : > { %v2151_v6 = vpop.permute.xlu1 %2150 }
 0xe25   : > { %v2159_v45 = vsel %vm304_vm2, %v4425_v61, %v2151_v6  ;;  %v4424_v15 = vadd.f32 -0.9189385, %v2134_v63  ;;  %v4423_v17 = vadd.f32 -0.9189385, %v2133_v10 }
 0xe26   : > { %v2121_v14 = vpop.permute.xlu0 %2120  ;;  %4962 = vmatpush3.msra.mxu1 %v2159_v45 }
 0xe27   : > { %v2132_v8 = vsub.f32 %v2112_v38, %v2121_v14  ;;  %4963 = vmatprep.subr.mxu1 %v5369_v26 }
 0xe28   : > { %v2149_v54 = vpop.permute.xlu1 %2148 }
 0xe29   : > { %v2158_v18 = vsel %vm304_vm2, %v4424_v15, %v2149_v54  ;;  %v4422_v22 = vadd.f32 -0.9189385, %v2132_v8 }
 0xe2a   : > { %v2147_v20 = vpop.permute.xlu0 %2146  ;;  %4964 = vmatpush3.msra.mxu1 %v2158_v18 }
 0xe2b   : > { %v2157_v43 = vsel %vm304_vm2, %v4423_v17, %v2147_v20  ;;  %4965 = vmatprep.subr.mxu1 %v5369_v26 }
 0xe2c   : > { %4966 = vmatpush3.msra.mxu1 %v2157_v43  ;;  %v2145_v23 = vpop.permute.xlu1 %2144 }
 0xe2d   : > { %v2156_v3 = vsel %vm304_vm2, %v4422_v22, %v2145_v23  ;;  %4967 = vmatprep.subr.mxu1 %v5369_v26 }
 0xe2e   : > { %4968 = vmatpush3.msra.mxu1 %v2156_v3 }
 0xe2f   : > { %4970 = vmatmul.mubr.msk.f32.vlgmr.msra.gmra.mxu1 %vm202_vm0, %v5785_v42  ;;  %4986 = vmatprep.subr.msk.mxu1 %vm317_vm1, %v6009_v49 }
 0xe30   : > { %4987 = vmatpush3.msk.msra.mxu1 %vm317_vm1, %v6009_v49  ;;  %4988 = vmatprep.mubr.msk.f32.mxu1 %vm304_vm2, %v2316_v19  ;;  %v2635_v14 = vpop.permute.xlu1 %2634 }
 0xe31   : > { %5008 = vmatprep.subr.mxu1 %v6019_v25 }
 0xe33   : > { %4989 = vmatmul.mubr.msk.f32.vlgmr.msra.gmra.mxu1 %vm304_vm2, %v4982_v12  ;;  %v2637_v12 = vpop.permute.xlu0 %2636 }
 0xe34   : > { %4991 = vmatprep.mubr.msk.f32.mxu1 %vm304_vm2, %v2326_v16  ;;  %5009 = vmatpush3.msra.mxu1 %v6019_v25  ;;  %v2631_v22 = vpop.permute.xlu1 %2630 }
 0xe35   : > { %5010 = vmatprep.subr.mxu1 %v6028_v1 }
 0xe36   : > { %5011 = vmatpush3.msra.mxu1 %v6028_v1 }
 0xe37   : > { %4992 = vmatmul.mubr.msk.f32.gmra.mxu1 %vm304_vm2, %v4985_v56  ;;  %5032 = vmatprep.subr.msk.mxu1 %vm747_vm4, %v6036_v44  ;;  %v2633_v18 = vpop.permute.xlu0 %2632 }
 0xeef   : > { %v6040_v21 = vpop.f32.mrf.mxu1 }
 0xef1   : > { %v4971_v62 = vpop.f32.mrf.mxu1 }
 0xef3   : > { %v4990_v53 = vpop.f32.mrf.mxu1 }
 0xef4   : > { %v2419_v33 = vadd.f32 %v6045_v30, %v4990_v53 }
 0xef5   : > { %v2413_v28 = vpop.f32.mrf.mxu1 }
 0xef6   : > { %v2414_v58 = vadd.f32 %v6045_v30, %v2413_v28  ;;  %v2433_v36 = vmax.f32 %v2419_v33, 0.0 }
 0xef7   : > { %v4993_v40 = vpop.f32.mrf.mxu1 }
 0xef8   : > { %v2429_v47 = vadd.f32 %v6045_v30, %v4993_v40  ;;  %v2432_v0 = vmax.f32 %v2414_v58, 0.0 }
 0xef9   : > { %v2423_v29 = vpop.f32.mrf.mxu1 }
 0xefa   : > { %v2435_v27 = vmax.f32 %v2429_v47, 0.0  ;;  %v2424_v4 = vadd.f32 %v6045_v30, %v2423_v29 }
 0xefc   : > { %v2434_v11 = vmax.f32 %v2424_v4, 0.0  ;;  %4994 = vmatprep.subr.mxu0 %v2435_v27 }
 0xefd   : > { %4995 = vmatpush3.msra.mxu0 %v2435_v27 }
 0xefe   : > { %4996 = vmatprep.subr.mxu0 %v2434_v11 }
 0xeff   : > { %4997 = vmatpush3.msra.mxu0 %v2434_v11 }
 0xf00   : > { %4998 = vmatprep.subr.mxu0 %v2433_v36 }
 0xf01   : > { %4999 = vmatpush3.msra.mxu0 %v2433_v36 }
 0xf02   : > { %5000 = vmatprep.subr.mxu0 %v2432_v0 }
 0xf03   : > { %5001 = vmatpush3.msra.mxu0 %v2432_v0 }
 0xf04   : > { %5003 = vmatmul.mubr.msk.f32.vlgmr.msra.gmra.mxu0 %vm202_vm0, %v6054_v32 }
 0xf05   : > { %5005 = vmatprep.mubr.msk.f32.mxu0 %vm202_vm0, %v6061_v5 }
 0xf08   : > { %5006 = vmatmul.mubr.msk.f32.gmra.mxu0 %vm202_vm0, %v6068_v50 }
 0xf09   : > { %5026 = vmatprep.mubr.msk.f32.mxu0 %vm202_vm0, %v5933_v39 }
 0xfc4   : > { %v5004_v7 = vpop.f32.mrf.mxu0 }
 0xfc6   : > { %v2502_v55 = vpop.f32.mrf.mxu0 }
 0xfc7   : > { %5012 = vmatprep.mubr.msk.f32.mxu1 %vm499_vm3, %v2502_v55 }
 0xfc8   : > { %v5007_v57 = vpop.f32.mrf.mxu0  ;;  %5013 = vmatmul.mubr.msk.f32.vlgmr.msra.gmra.mxu1 %vm499_vm3, %v5004_v7  ;;  %v6153_v7 = vld [vmem:[%s6558_s1 + $0x38] sm:$0xff] }
 0xfc9   : > { %5033 = vmatpush3.msk.msra.mxu1 %vm747_vm4, %v6036_v44 }
 0xfca   : > { %v2512_v59 = vpop.f32.mrf.mxu0  ;;  %5054 = vmatprep.subr.mxu1 %v6081_v60 }
 0xfcb   : > { %5015 = vmatprep.mubr.msk.f32.mxu1 %vm499_vm3, %v2512_v59 }
 0xfcc   : > { %5016 = vmatmul.mubr.msk.f32.gmra.mxu1 %vm499_vm3, %v5007_v57 }
0x1088   : > { %v5014_v48 = vpop.f32.mrf.mxu1 }
0x1089   : > { %v6092_v34 = vadd.f32 %v6089_v46, %v5014_v48  ;;  %v6162_v48 = vld [vmem:[%s6558_s1 + $0x30] ss:$0 sm:$0xff] }
0x108a   : > { %v2599_v41 = vpop.f32.mrf.mxu1 }
0x108b   : > { %v6095_v37 = vadd.f32 %v6089_v46, %v2599_v41  ;;  %v2620_v63 = vmul.f32 1.442695, %v6092_v34  ;;  %v3039_v16 = vmul.f32 %v6092_v34, %v6092_v34 }
0x108c   : > { %v5017_v13 = vpop.f32.mrf.mxu1 }
0x108d   : > { %v6098_v61 = vadd.f32 %v6089_v46, %v5017_v13  ;;  %v2618_v45 = vmul.f32 1.442695, %v6095_v37  ;;  %v3038_v62 = vmul.f32 %v6095_v37, %v6095_v37 }
0x108e   : > { %v2609_v52 = vpop.f32.mrf.mxu1 }
0x108f   : > { %v2624_v6 = vmul.f32 1.442695, %v6098_v61  ;;  %v6103_v10 = vadd.f32 %v6089_v46, %v2609_v52  ;;  %v3041_v3 = vmul.f32 %v6098_v61, %v6098_v61 }
0x1091   : > { %5257 = vpow2.f32 %v2624_v6  ;;  %v2622_v38 = vmul.f32 1.442695, %v6103_v10  ;;  %v3040_v56 = vmul.f32 %v6103_v10, %v6103_v10 }
0x1092   : > { %5259 = vpow2.f32 %v2620_v63 }
0x1093   : > { %5261 = vpow2.f32 %v2622_v38 }
0x1094   : > { %5263 = vpow2.f32 %v2618_v45 }
0x109e   : > { %v6107_v15 = vpop.eup %5257 }
0x109f   : > { %v6109_v8 = vpop.eup %5259  ;;  %v2645_v54 = vmul.f32 %v6107_v15, %v2637_v12 }
0x10a0   : > { %v6112_v17 = vpop.eup %5261  ;;  %v2643_v43 = vmul.f32 %v6109_v8, %v2633_v18 }
0x10a1   : > { %v2644_v19 = vmul.f32 %v6112_v17, %v2635_v14  ;;  %2656 = vrot.lane.b32.xlu0 %v2645_v54, %s5366_s4  ;;  %v6116_v20 = vpop.eup %5263  ;;  %v6178_v54 = vld [vmem:[%s5453_s30 + $0x78] sm:$0xff] }
0x10a2   : > { %v2642_v23 = vmul.f32 %v6116_v20, %v2631_v22  ;;  %v6183_v22 = vld [vmem:[%s5453_s30 + $0x70] sm:$0xff] }
0x10a3   : > { %2654 = vrot.lane.b32.xlu1 %v2644_v19, %s5366_s4 }
0x10a5   : > { %2652 = vrot.lane.b32.xlu0 %v2643_v43, %s5366_s4 }
0x10a7   : > { %2650 = vrot.lane.b32.xlu1 %v2642_v23, %s5366_s4  ;;  %v6188_v23 = vld [vmem:[%s5453_s30 + $0x68] sm:$0xff] }
0x10a9   : > { %3052 = vrot.lane.b32.xlu0 %v3041_v3, %s5367_s7 }
0x10ab   : > { %3050 = vrot.lane.b32.xlu1 %v3040_v56, %s5367_s7  ;;  %v6194_v56 = vld [vmem:[%s5453_s30 + $0x60] sm:$0xff] }
0x10ad   : > { %3048 = vrot.lane.b32.xlu0 %v3039_v16, %s5367_s7 }
0x10af   : > { %3046 = vrot.lane.b32.xlu1 %v3038_v62, %s5367_s7  ;;  %v6214_v62 = vld [vmem:[%s6558_s1 + $0x48] ss:$0 sm:$0xff] }
0x1113   : > { %v2657_v53 = vpop.permute.xlu0 %2656 }
0x1114   : > { %v2665_v28 = vadd.f32 %v2657_v53, %v6098_v61 }
0x1115   : > { %v2655_v40 = vpop.permute.xlu1 %2654 }
0x1116   : > { %v2664_v47 = vadd.f32 %v2655_v40, %v6103_v10  ;;  %5018 = vmatprep.subr.mxu0 %v2665_v28 }
0x1117   : > { %5019 = vmatpush3.msra.mxu0 %v2665_v28  ;;  %v2653_v29 = vpop.permute.xlu0 %2652 }
0x1118   : > { %v2663_v33 = vadd.f32 %v2653_v29, %v6092_v34  ;;  %5020 = vmatprep.subr.mxu0 %v2664_v47 }
0x1119   : > { %5021 = vmatpush3.msra.mxu0 %v2664_v47  ;;  %v2651_v27 = vpop.permute.xlu1 %2650 }
0x111a   : > { %v2662_v4 = vadd.f32 %v2651_v27, %v6095_v37  ;;  %5022 = vmatprep.subr.mxu0 %v2663_v33 }
0x111b   : > { %5023 = vmatpush3.msra.mxu0 %v2663_v33 }
0x111c   : > { %5024 = vmatprep.subr.mxu0 %v2662_v4 }
0x111d   : > { %5025 = vmatpush3.msra.mxu0 %v2662_v4 }
0x111e   : > { %5027 = vmatmul.mubr.msk.f32.vlgmr.msra.gmra.mxu0 %vm202_vm0, %v6054_v32 }
0x111f   : > { %5029 = vmatprep.mubr.msk.f32.mxu0 %vm202_vm0, %v6061_v5 }
0x1122   : > { %5030 = vmatmul.mubr.msk.f32.gmra.mxu0 %vm202_vm0, %v6068_v50 }
0x1123   : > { %5048 = vmatprep.mubr.msk.f32.mxu0 %vm202_vm0, %v5933_v39 }
0x11de   : > { %v5028_v58 = vpop.f32.mrf.mxu0 }
0x11e0   : > { %v2732_v11 = vpop.f32.mrf.mxu0 }
0x11e1   : > { %5034 = vmatprep.mubr.msk.f32.mxu1 %vm734_vm5, %v2732_v11 }
0x11e2   : > { %v5031_v36 = vpop.f32.mrf.mxu0  ;;  %5035 = vmatmul.mubr.msk.f32.vlgmr.msra.gmra.mxu1 %vm734_vm5, %v5028_v58 }
0x11e3   : > { %5055 = vmatpush3.msra.mxu1 %v6081_v60 }
0x11e4   : > { %v2742_v0 = vpop.f32.mrf.mxu0  ;;  %5056 = vmatprep.subr.mxu1 %v6153_v7 }
0x11e5   : > { %5037 = vmatprep.mubr.msk.f32.mxu1 %vm734_vm5, %v2742_v0  ;;  %5057 = vmatpush3.msra.mxu1 %v6153_v7 }
0x11e6   : > { %5038 = vmatmul.mubr.msk.f32.gmra.mxu1 %vm734_vm5, %v5031_v36  ;;  %5075 = vmatprep.subr.mxu1 %v6178_v54 }
0x12a2   : > { %v5036_v55 = vpop.f32.mrf.mxu1 }
0x12a3   : > { %v2835_v63 = vadd.f32 %v6162_v48, %v5036_v55 }
0x12a4   : > { %v2829_v57 = vpop.f32.mrf.mxu1 }
0x12a5   : > { %v2830_v45 = vadd.f32 %v6162_v48, %v2829_v57  ;;  %v2849_v12 = vmax.f32 %v2835_v63, 0.0 }
0x12a6   : > { %v5039_v59 = vpop.f32.mrf.mxu1 }
0x12a7   : > { %v2845_v41 = vadd.f32 %v6162_v48, %v5039_v59  ;;  %v2848_v14 = vmax.f32 %v2830_v45, 0.0 }
0x12a8   : > { %v2839_v13 = vpop.f32.mrf.mxu1 }
0x12a9   : > { %v2851_v52 = vmax.f32 %v2845_v41, 0.0  ;;  %v2840_v6 = vadd.f32 %v6162_v48, %v2839_v13  ;;  %v3053_v41 = vpop.permute.xlu0 %3052  ;;  %v3037_v13 = vmul.f32 %v6107_v15, %v6107_v15 }
0x12ab   : > { %v2850_v38 = vmax.f32 %v2840_v6, 0.0  ;;  %5040 = vmatprep.subr.mxu0 %v2851_v52  ;;  %v3061_v6 = vadd.f32 %v3053_v41, %v3037_v13 }
0x12ac   : > { %5041 = vmatpush3.msra.mxu0 %v2851_v52  ;;  %v3051_v52 = vpop.permute.xlu1 %3050 }
0x12ad   : > { %5042 = vmatprep.subr.mxu0 %v2850_v38 }
0x12ae   : > { %5043 = vmatpush3.msra.mxu0 %v2850_v38  ;;  %v3036_v38 = vmul.f32 %v6112_v17, %v6112_v17 }
0x12af   : > { %5044 = vmatprep.subr.mxu0 %v2849_v12 }
0x12b0   : > { %5045 = vmatpush3.msra.mxu0 %v2849_v12 }
0x12b1   : > { %5046 = vmatprep.subr.mxu0 %v2848_v14 }
0x12b2   : > { %5047 = vmatpush3.msra.mxu0 %v2848_v14  ;;  %v3049_v14 = vpop.permute.xlu0 %3048 }
0x12b3   : > { %5049 = vmatmul.mubr.msk.f32.vlgmr.msra.gmra.mxu0 %vm202_vm0, %v6054_v32  ;;  %5064 = vmatprep.subr.mxu0 %v5369_v26 }
0x12b4   : > { %5051 = vmatprep.mubr.msk.f32.mxu0 %vm202_vm0, %v6061_v5 }
0x12b7   : > { %5052 = vmatmul.mubr.msk.f32.gmra.mxu0 %vm202_vm0, %v6068_v50 }
0x12b8   : > { %5072 = vmatprep.mubr.msk.f32.mxu0 %vm5370_vm6, %v5369_v26 }
0x1373   : > { %v5050_v18 = vpop.f32.mrf.mxu0 }
0x1375   : > { %v2918_v19 = vpop.f32.mrf.mxu0 }
0x1376   : > { %5058 = vmatprep.mubr.msk.f32.mxu1 %vm499_vm3, %v2918_v19  ;;  %v3060_v19 = vadd.f32 %v3051_v52, %v3036_v38 }
0x1377   : > { %v5053_v43 = vpop.f32.mrf.mxu0  ;;  %5059 = vmatmul.mubr.msk.f32.vlgmr.msra.gmra.mxu1 %vm499_vm3, %v5050_v18  ;;  %v4469_v18 = vadd.f32 -1.0, %v3061_v6 }
0x1378   : > { %5076 = vmatpush3.msra.mxu1 %v6178_v54 }
0x1379   : > { %v2928_v3 = vpop.f32.mrf.mxu0  ;;  %5077 = vmatprep.subr.mxu1 %v6183_v22  ;;  %v3069_v17 = vmul.f32 0.5, %v4469_v18 }
0x137a   : > { %5061 = vmatprep.mubr.msk.f32.mxu1 %vm499_vm3, %v2928_v3  ;;  %5078 = vmatpush3.msra.mxu1 %v6183_v22  ;;  %v3047_v3 = vpop.permute.xlu1 %3046 }
0x137b   : > { %5062 = vmatmul.mubr.msk.f32.gmra.mxu1 %vm499_vm3, %v5053_v43  ;;  %5079 = vmatprep.subr.mxu1 %v6188_v23  ;;  %v3035_v43 = vmul.f32 %v6109_v8, %v6109_v8  ;;  %v3073_v8 = vsub.f32 %v3069_v17, %v6098_v61 }
0x137c   : > { %5080 = vmatpush3.msra.mxu1 %v6188_v23  ;;  %5083 = vmatprep.mubr.msk.f32.mxu1 %vm202_vm0, %v5933_v39 }
0x137d   : > { %5081 = vmatprep.subr.mxu1 %v6194_v56 }
0x137e   : > { %5082 = vmatpush3.msra.mxu1 %v6194_v56 }
0x137f   : > { %5084 = vmatmul.mubr.msk.f32.vlgmr.msra.gmra.mxu1 %vm202_vm0, %v6054_v32 }
0x1380   : > { %5086 = vmatprep.mubr.msk.f32.mxu1 %vm202_vm0, %v6061_v5 }
0x1383   : > { %5087 = vmatmul.mubr.msk.f32.gmra.mxu1 %vm202_vm0, %v6068_v50 }
0x1384   : > { %5105 = vmatprep.mubr.msk.f32.mxu1 %vm202_vm0, %v5933_v39 }
0x1437   : > { %v5060_v16 = vpop.f32.mrf.mxu1 }
0x1438   : > { %v6217_v53 = vadd.f32 %v6214_v62, %v5060_v16  ;;  %v3059_v16 = vadd.f32 %v3049_v14, %v3035_v43 }
0x1439   : > { %v3015_v28 = vpop.f32.mrf.mxu1 }
0x143a   : > { %v3079_v40 = vsub.f32 0.0, %v6217_v53  ;;  %v6221_v47 = vadd.f32 %v6214_v62, %v3015_v28  ;;  %v3034_v28 = vmul.f32 %v6116_v20, %v6116_v20 }
0x143b   : > { %v5063_v29 = vpop.f32.mrf.mxu1 }
0x143c   : > { %v3084_v33 = vmul.f32 1.442695, %v3079_v40  ;;  %v3078_v27 = vsub.f32 0.0, %v6221_v47  ;;  %v6225_v4 = vadd.f32 %v6214_v62, %v5063_v29  ;;  %v4468_v40 = vadd.f32 -1.0, %v3060_v19 }
0x143d   : > { %v3025_v58 = vpop.f32.mrf.mxu1  ;;  %v3058_v29 = vadd.f32 %v3047_v3, %v3034_v28  ;;  %v3074_v13 = vsub.f32 %v5915_v51, %v6221_v47 }
0x143e   : > { %5265 = vpow2.f32 %v3084_v33  ;;  %v3082_v11 = vmul.f32 1.442695, %v3078_v27  ;;  %v3081_v36 = vsub.f32 0.0, %v6225_v4  ;;  %v6229_v0 = vadd.f32 %v6214_v62, %v3025_v58 }
0x143f   : > { %v4467_v33 = vadd.f32 -1.0, %v3059_v16  ;;  %v3068_v27 = vmul.f32 0.5, %v4468_v40  ;;  %v4466_v58 = vadd.f32 -1.0, %v3058_v29  ;;  %v5085_v17 = vpop.f32.mrf.mxu1 }
0x1440   : > { %5267 = vpow2.f32 %v3082_v11  ;;  %v3088_v55 = vmul.f32 1.442695, %v3081_v36  ;;  %v3080_v57 = vsub.f32 0.0, %v6229_v0  ;;  %v3076_v52 = vsub.f32 %v5904_v2, %v6229_v0 }
0x1441   : > { %v3067_v20 = vmul.f32 0.5, %v4467_v33  ;;  %v3072_v11 = vsub.f32 %v3068_v27, %v6103_v10  ;;  %v3066_v36 = vmul.f32 0.5, %v4466_v58 }
0x1442   : > { %5269 = vpow2.f32 %v3088_v55  ;;  %v3086_v59 = vmul.f32 1.442695, %v3080_v57  ;;  %v3077_v57 = vsub.f32 %v5899_v24, %v6225_v4 }
0x1443   : > { %v3071_v55 = vsub.f32 %v3067_v20, %v6092_v34  ;;  %v3070_v61 = vsub.f32 %v3066_v36, %v6095_v37  ;;  %v3075_v37 = vsub.f32 %v5909_v35, %v6217_v53  ;;  %v3318_v20 = vpop.f32.mrf.mxu1 }
0x1444   : > { %5271 = vpow2.f32 %v3086_v59 }
0x144b   : > { %v5266_v63 = vpop.eup %5265 }
0x144c   : > { %3096 = vrot.lane.b32.xlu0 %v5266_v63, %s5368_s25 }
0x144d   : > { %v5268_v45 = vpop.eup %5267 }
0x144e   : > { %3094 = vrot.lane.b32.xlu1 %v5268_v45, %s5368_s25 }
0x144f   : > { %v5270_v12 = vpop.eup %5269 }
0x1450   : > { %3100 = vrot.lane.b32.xlu0 %v5270_v12, %s5368_s25 }
0x1451   : > { %v5272_v15 = vpop.eup %5271 }
0x1452   : > { %3098 = vrot.lane.b32.xlu1 %v5272_v15, %s5368_s25 }
0x1454   : > { %3128 = vrot.lane.b32.xlu0 %v6225_v4, %s5368_s25 }
0x1456   : > { %3126 = vrot.lane.b32.xlu1 %v6229_v0, %s5368_s25 }
0x1458   : > { %3124 = vrot.lane.b32.xlu0 %v6217_v53, %s5368_s25 }
0x145a   : > { %3152 = vrot.lane.b32.xlu1 %v3073_v8, %s5368_s25 }
0x145c   : > { %3122 = vrot.lane.b32.xlu0 %v6221_v47, %s5368_s25 }
0x145e   : > { %3150 = vrot.lane.b32.xlu1 %v3072_v11, %s5368_s25 }
0x1460   : > { %3148 = vrot.lane.b32.xlu0 %v3071_v55, %s5368_s25 }
0x1462   : > { %3146 = vrot.lane.b32.xlu1 %v3070_v61, %s5368_s25 }
0x1464   : > { %3638 = vrot.lane.b32.xlu0 %v6178_v54, %s5365_s27 }
0x1466   : > { %3636 = vrot.lane.b32.xlu1 %v6183_v22, %s5365_s27 }
0x1468   : > { %3634 = vrot.lane.b32.xlu0 %v6188_v23, %s5365_s27 }
0x146a   : > { %3632 = vrot.lane.b32.xlu1 %v6194_v56, %s5365_s27  ;;  %s162_s27 = sand.u32 1, %s5355_s13  }
0x146b   : > { %s6517_s16 = scalar_lea.sflag [#allocation3], %s162_s27 }
0x14be   : > { %v3097_v34 = vpop.permute.xlu0 %3096 }
0x14bf   : > { %v3107_v41 = vmul.f32 %v3097_v34, %v3075_v37 }
0x14c0   : > { %v3095_v10 = vpop.permute.xlu1 %3094 }
0x14c1   : > { %v3106_v45 = vmul.f32 %v3095_v10, %v3074_v13  ;;  %v3111_v18 = vmul.f32 -0.5, %v3107_v41  ;;  %v5088_v10 = vpop.f32.mrf.mxu1 }
0x14c2   : > { %v3101_v59 = vpop.permute.xlu0 %3100 }
0x14c3   : > { %v3109_v63 = vmul.f32 %v3101_v59, %v3077_v57  ;;  %v3110_v43 = vmul.f32 -0.5, %v3106_v45  ;;  %v3115_v51 = vmul.f32 %v3111_v18, %v3107_v41  ;;  %v3328_v37 = vpop.f32.mrf.mxu1 }
0x14c4   : > { %v3099_v6 = vpop.permute.xlu1 %3098 }
0x14c5   : > { %v3113_v38 = vmul.f32 -0.5, %v3109_v63  ;;  %v3108_v12 = vmul.f32 %v3099_v6, %v3076_v52  ;;  %v3114_v0 = vmul.f32 %v3110_v43, %v3106_v45 }
0x14c6   : > { %v3129_v14 = vpop.permute.xlu0 %3128 }
0x14c7   : > { %v3112_v19 = vmul.f32 -0.5, %v3108_v12  ;;  %v3117_v35 = vmul.f32 %v3113_v38, %v3109_v63 }
0x14c8   : > { %v3127_v53 = vpop.permute.xlu1 %3126 }
0x14c9   : > { %v3137_v24 = vsub.f32 %v3117_v35, %v3129_v14  ;;  %v3116_v4 = vmul.f32 %v3112_v19, %v3108_v12 }
0x14ca   : > { %v3125_v15 = vpop.permute.xlu0 %3124 }
0x14cb   : > { %v4473_v3 = vadd.f32 -0.9189385, %v3137_v24  ;;  %v3136_v16 = vsub.f32 %v3116_v4, %v3127_v53  ;;  %v3135_v28 = vsub.f32 %v3115_v51, %v3125_v15 }
0x14cc   : > { %v3153_v47 = vpop.permute.xlu1 %3152 }
0x14cd   : > { %v3161_v2 = vsel %vm304_vm2, %v4473_v3, %v3153_v47  ;;  %v4472_v29 = vadd.f32 -0.9189385, %v3136_v16  ;;  %v4471_v27 = vadd.f32 -0.9189385, %v3135_v28 }
0x14ce   : > { %v3123_v40 = vpop.permute.xlu0 %3122  ;;  %5065 = vmatpush3.msra.mxu0 %v3161_v2 }
0x14cf   : > { %v3134_v33 = vsub.f32 %v3114_v0, %v3123_v40  ;;  %5066 = vmatprep.subr.mxu0 %v5369_v26 }
0x14d0   : > { %v3151_v8 = vpop.permute.xlu1 %3150 }
0x14d1   : > { %v3160_v58 = vsel %vm304_vm2, %v4472_v29, %v3151_v8  ;;  %v4470_v36 = vadd.f32 -0.9189385, %v3134_v33 }
0x14d2   : > { %v3149_v11 = vpop.permute.xlu0 %3148  ;;  %5067 = vmatpush3.msra.mxu0 %v3160_v58 }
0x14d3   : > { %v3159_v55 = vsel %vm304_vm2, %v4471_v27, %v3149_v11  ;;  %5068 = vmatprep.subr.mxu0 %v5369_v26 }
0x14d4   : > { %5069 = vmatpush3.msra.mxu0 %v3159_v55  ;;  %v3147_v61 = vpop.permute.xlu1 %3146 }
0x14d5   : > { %v3158_v34 = vsel %vm304_vm2, %v4470_v36, %v3147_v61  ;;  %5070 = vmatprep.subr.mxu0 %v5369_v26 }
0x14d6   : > { %5071 = vmatpush3.msra.mxu0 %v3158_v34  ;;  %v3639_v0 = vpop.permute.xlu0 %3638 }
0x14d7   : > { %5073 = vmatmul.mubr.msk.f32.vlgmr.msra.gmra.mxu0 %vm202_vm0, %v5785_v42  ;;  %5089 = vmatprep.subr.msk.mxu0 %vm317_vm1, %v6009_v49 }
0x14d8   : > { %5090 = vmatpush3.msk.msra.mxu0 %vm317_vm1, %v6009_v49  ;;  %5091 = vmatprep.mubr.msk.f32.mxu0 %vm304_vm2, %v3318_v20 }
0x14d9   : > { %5111 = vmatprep.subr.mxu0 %v6019_v25 }
0x14db   : > { %5092 = vmatmul.mubr.msk.f32.vlgmr.msra.gmra.mxu0 %vm304_vm2, %v5085_v17  ;;  %v3637_v17 = vpop.permute.xlu1 %3636 }
0x14dc   : > { %5094 = vmatprep.mubr.msk.f32.mxu0 %vm304_vm2, %v3328_v37  ;;  %5112 = vmatpush3.msra.mxu0 %v6019_v25 }
0x14dd   : > { %5113 = vmatprep.subr.mxu0 %v6028_v1 }
0x14de   : > { %5114 = vmatpush3.msra.mxu0 %v6028_v1 }
0x14df   : > { %5095 = vmatmul.mubr.msk.f32.gmra.mxu0 %vm304_vm2, %v5088_v10  ;;  %5135 = vmatprep.subr.msk.mxu0 %vm747_vm4, %v6036_v44  ;;  %v3633_v20 = vpop.permute.xlu1 %3632 }
0x1597   : > { %v6299_v49 = vpop.f32.mrf.mxu0 }
0x1599   : > { %v5074_v57 = vpop.f32.mrf.mxu0 }
0x159b   : > { %v5093_v59 = vpop.f32.mrf.mxu0 }
0x159c   : > { %v3421_v25 = vadd.f32 %v6045_v30, %v5093_v59 }
0x159d   : > { %v3415_v41 = vpop.f32.mrf.mxu0 }
0x159e   : > { %v3416_v1 = vadd.f32 %v6045_v30, %v3415_v41  ;;  %v3435_v12 = vmax.f32 %v3421_v25, 0.0 }
0x159f   : > { %v5096_v13 = vpop.f32.mrf.mxu0 }
0x15a0   : > { %v3431_v63 = vadd.f32 %v6045_v30, %v5096_v13  ;;  %v3434_v14 = vmax.f32 %v3416_v1, 0.0 }
0x15a1   : > { %v3425_v52 = vpop.f32.mrf.mxu0 }
0x15a2   : > { %v3437_v6 = vmax.f32 %v3431_v63, 0.0  ;;  %v3426_v45 = vadd.f32 %v6045_v30, %v3425_v52 }
0x15a4   : > { %v3436_v38 = vmax.f32 %v3426_v45, 0.0  ;;  %5097 = vmatprep.subr.mxu1 %v3437_v6 }
0x15a5   : > { %5098 = vmatpush3.msra.mxu1 %v3437_v6 }
0x15a6   : > { %5099 = vmatprep.subr.mxu1 %v3436_v38 }
0x15a7   : > { %5100 = vmatpush3.msra.mxu1 %v3436_v38 }
0x15a8   : > { %5101 = vmatprep.subr.mxu1 %v3435_v12 }
0x15a9   : > { %5102 = vmatpush3.msra.mxu1 %v3435_v12 }
0x15aa   : > { %5103 = vmatprep.subr.mxu1 %v3434_v14 }
0x15ab   : > { %5104 = vmatpush3.msra.mxu1 %v3434_v14 }
0x15ac   : > { %5106 = vmatmul.mubr.msk.f32.vlgmr.msra.gmra.mxu1 %vm202_vm0, %v6054_v32 }
0x15ad   : > { %5108 = vmatprep.mubr.msk.f32.mxu1 %vm202_vm0, %v6061_v5 }
0x15b0   : > { %5109 = vmatmul.mubr.msk.f32.gmra.mxu1 %vm202_vm0, %v6068_v50 }
0x15b1   : > { %5129 = vmatprep.mubr.msk.f32.mxu1 %vm202_vm0, %v5933_v39 }
0x166c   : > { %v5107_v30 = vpop.f32.mrf.mxu1 }
0x166e   : > { %v3504_v18 = vpop.f32.mrf.mxu1 }
0x166f   : > { %5115 = vmatprep.mubr.msk.f32.mxu0 %vm499_vm3, %v3504_v18 }
0x1670   : > { %v5110_v19 = vpop.f32.mrf.mxu1  ;;  %5116 = vmatmul.mubr.msk.f32.vlgmr.msra.gmra.mxu0 %vm499_vm3, %v5107_v30 }
0x1671   : > { %5136 = vmatpush3.msk.msra.mxu0 %vm747_vm4, %v6036_v44 }
0x1672   : > { %v3514_v35 = vpop.f32.mrf.mxu1  ;;  %5157 = vmatprep.subr.mxu0 %v6081_v60 }
0x1673   : > { %5118 = vmatprep.mubr.msk.f32.mxu0 %vm499_vm3, %v3514_v35 }
0x1674   : > { %5119 = vmatmul.mubr.msk.f32.gmra.mxu0 %vm499_vm3, %v5110_v19 }
0x1730   : > { %v5117_v53 = vpop.f32.mrf.mxu0 }
0x1731   : > { %v6321_v43 = vadd.f32 %v6089_v46, %v5117_v53 }
0x1732   : > { %v3601_v24 = vpop.f32.mrf.mxu0 }
0x1733   : > { %v6324_v15 = vadd.f32 %v6089_v46, %v3601_v24  ;;  %v3622_v44 = vmul.f32 1.442695, %v6321_v43  ;;  %v4041_v34 = vmul.f32 %v6321_v43, %v6321_v43 }
0x1734   : > { %v5120_v4 = vpop.f32.mrf.mxu0 }
0x1735   : > { %v6327_v3 = vadd.f32 %v6089_v46, %v5120_v4  ;;  %v3620_v28 = vmul.f32 1.442695, %v6324_v15  ;;  %v4040_v10 = vmul.f32 %v6324_v15, %v6324_v15 }
0x1736   : > { %v3611_v16 = vpop.f32.mrf.mxu0 }
0x1737   : > { %v3626_v51 = vmul.f32 1.442695, %v6327_v3  ;;  %v6332_v47 = vadd.f32 %v6089_v46, %v3611_v16  ;;  %v3635_v46 = vpop.permute.xlu0 %3634  ;;  %v4043_v55 = vmul.f32 %v6327_v3, %v6327_v3 }
0x1739   : > { %5273 = vpow2.f32 %v3626_v51  ;;  %v3624_v2 = vmul.f32 1.442695, %v6332_v47  ;;  %v4042_v61 = vmul.f32 %v6332_v47, %v6332_v47 }
0x173a   : > { %5275 = vpow2.f32 %v3622_v44 }
0x173b   : > { %5277 = vpow2.f32 %v3624_v2 }
0x173c   : > { %5279 = vpow2.f32 %v3620_v28 }
0x1746   : > { %v6336_v40 = vpop.eup %5273 }
0x1747   : > { %v6338_v29 = vpop.eup %5275  ;;  %v3647_v33 = vmul.f32 %v6336_v40, %v3639_v0 }
0x1748   : > { %v6341_v8 = vpop.eup %5277  ;;  %v3645_v11 = vmul.f32 %v6338_v29, %v3635_v46 }
0x1749   : > { %v3646_v27 = vmul.f32 %v6341_v8, %v3637_v17  ;;  %3658 = vrot.lane.b32.xlu0 %v3647_v33, %s5366_s4  ;;  %v6345_v58 = vpop.eup %5279 }
0x174a   : > { %v3644_v36 = vmul.f32 %v6345_v58, %v3633_v20 }
0x174b   : > { %3656 = vrot.lane.b32.xlu1 %v3646_v27, %s5366_s4 }
0x174d   : > { %3654 = vrot.lane.b32.xlu0 %v3645_v11, %s5366_s4 }
0x174f   : > { %3652 = vrot.lane.b32.xlu1 %v3644_v36, %s5366_s4  ;;  %s4329_s4 = sshll.u32 %s162_s27, 5 }
0x1751   : > { %4054 = vrot.lane.b32.xlu0 %v4043_v55, %s5367_s7 }
0x1753   : > { %4052 = vrot.lane.b32.xlu1 %v4042_v61, %s5367_s7 }
0x1755   : > { %4050 = vrot.lane.b32.xlu0 %v4041_v34, %s5367_s7 }
0x1757   : > { %4048 = vrot.lane.b32.xlu1 %v4040_v10, %s5367_s7  ;;  %s6482_s7 = scalar_lea.vmem [#allocation2], %s4329_s4 }
0x17bb   : > { %v3659_v37 = vpop.permute.xlu0 %3658 }
0x17bc   : > { %v3667_v57 = vadd.f32 %v3659_v37, %v6327_v3  ;;  %v4039_v37 = vmul.f32 %v6336_v40, %v6336_v40 }
0x17bd   : > { %v3657_v59 = vpop.permute.xlu1 %3656 }
0x17be   : > { %v3666_v41 = vadd.f32 %v3657_v59, %v6332_v47  ;;  %5121 = vmatprep.subr.mxu1 %v3667_v57 }
0x17bf   : > { %5122 = vmatpush3.msra.mxu1 %v3667_v57  ;;  %v3655_v13 = vpop.permute.xlu0 %3654 }
0x17c0   : > { %v3665_v63 = vadd.f32 %v3655_v13, %v6321_v43  ;;  %5123 = vmatprep.subr.mxu1 %v3666_v41 }
0x17c1   : > { %5124 = vmatpush3.msra.mxu1 %v3666_v41  ;;  %v3653_v52 = vpop.permute.xlu1 %3652 }
0x17c2   : > { %v3664_v25 = vadd.f32 %v3653_v52, %v6324_v15  ;;  %5125 = vmatprep.subr.mxu1 %v3665_v63 }
0x17c3   : > { %5126 = vmatpush3.msra.mxu1 %v3665_v63  ;;  %v4055_v10 = vpop.permute.xlu0 %4054 }
0x17c4   : > { %5127 = vmatprep.subr.mxu1 %v3664_v25  ;;  %v4063_v41 = vadd.f32 %v4055_v10, %v4039_v37 }
0x17c5   : > { %5128 = vmatpush3.msra.mxu1 %v3664_v25  ;;  %v4053_v59 = vpop.permute.xlu1 %4052 }
0x17c6   : > { %5130 = vmatmul.mubr.msk.f32.vlgmr.msra.gmra.mxu1 %vm202_vm0, %v6054_v32  ;;  %v4517_v25 = vadd.f32 -1.0, %v4063_v41 }
0x17c7   : > { %5132 = vmatprep.mubr.msk.f32.mxu1 %vm202_vm0, %v6061_v5  ;;  %v4051_v52 = vpop.permute.xlu0 %4050 }
0x17ca   : > { %5133 = vmatmul.mubr.msk.f32.gmra.mxu1 %vm202_vm0, %v6068_v50 }
0x17cb   : > { %5151 = vmatprep.mubr.msk.f32.mxu1 %vm202_vm0, %v5933_v39 }
0x1886   : > { %v5131_v6 = vpop.f32.mrf.mxu1 }
0x1888   : > { %v3734_v45 = vpop.f32.mrf.mxu1 }
0x1889   : > { %5137 = vmatprep.mubr.msk.f32.mxu0 %vm734_vm5, %v3734_v45  ;;  %v4037_v45 = vmul.f32 %v6338_v29, %v6338_v29 }
0x188a   : > { %v5134_v1 = vpop.f32.mrf.mxu1  ;;  %5138 = vmatmul.mubr.msk.f32.vlgmr.msra.gmra.mxu0 %vm734_vm5, %v5131_v6 }
0x188b   : > { %5158 = vmatpush3.msra.mxu0 %v6081_v60 }
0x188c   : > { %v3744_v38 = vpop.f32.mrf.mxu1  ;;  %5159 = vmatprep.subr.mxu0 %v6153_v7 }
0x188d   : > { %5140 = vmatprep.mubr.msk.f32.mxu0 %vm734_vm5, %v3744_v38  ;;  %5160 = vmatpush3.msra.mxu0 %v6153_v7  ;;  %v4061_v38 = vadd.f32 %v4051_v52, %v4037_v45 }
0x188e   : > { %5141 = vmatmul.mubr.msk.f32.gmra.mxu0 %vm734_vm5, %v5134_v1  ;;  %v4049_v1 = vpop.permute.xlu1 %4048 }
0x194a   : > { %v5139_v12 = vpop.f32.mrf.mxu0 }
0x194b   : > { %v3837_v19 = vadd.f32 %v6162_v48, %v5139_v12  ;;  %v4036_v12 = vmul.f32 %v6345_v58, %v6345_v58 }
0x194c   : > { %v3831_v39 = vpop.f32.mrf.mxu0 }
0x194d   : > { %v3832_v53 = vadd.f32 %v6162_v48, %v3831_v39  ;;  %v3851_v4 = vmax.f32 %v3837_v19, 0.0 }
0x194e   : > { %v5142_v14 = vpop.f32.mrf.mxu0 }
0x194f   : > { %v3847_v30 = vadd.f32 %v6162_v48, %v5142_v14  ;;  %v3850_v7 = vmax.f32 %v3832_v53, 0.0  ;;  %v4060_v14 = vadd.f32 %v4049_v1, %v4036_v12 }
0x1950   : > { %v3841_v18 = vpop.f32.mrf.mxu0 }
0x1951   : > { %v3853_v35 = vmax.f32 %v3847_v30, 0.0  ;;  %v3842_v60 = vadd.f32 %v6162_v48, %v3841_v18  ;;  %v4515_v30 = vadd.f32 -1.0, %v4061_v38  ;;  %v4514_v19 = vadd.f32 -1.0, %v4060_v14 }
0x1953   : > { %v3852_v24 = vmax.f32 %v3842_v60, 0.0  ;;  %5143 = vmatprep.subr.mxu1 %v3853_v35  ;;  %v4069_v58 = vmul.f32 0.5, %v4515_v30  ;;  %v4068_v60 = vmul.f32 0.5, %v4514_v19 }
0x1954   : > { %5144 = vmatpush3.msra.mxu1 %v3853_v35 }
0x1955   : > { %5145 = vmatprep.subr.mxu1 %v3852_v24  ;;  %v4073_v53 = vsub.f32 %v4069_v58, %v6321_v43 }
0x1956   : > { %5146 = vmatpush3.msra.mxu1 %v3852_v24  ;;  %v2230_v24 = vsel %vm304_vm2, %v6040_v21, 0.0 }
0x1957   : > { %5147 = vmatprep.subr.mxu1 %v3851_v4 }
0x1958   : > { %5148 = vmatpush3.msra.mxu1 %v3851_v4 }
0x1959   : > { %5149 = vmatprep.subr.mxu1 %v3850_v7 }
0x195a   : > { %5150 = vmatpush3.msra.mxu1 %v3850_v7 }
0x195b   : > { %5152 = vmatmul.mubr.msk.f32.vlgmr.msra.gmra.mxu1 %vm202_vm0, %v6054_v32  ;;  %5167 = vmatprep.subr.mxu1 %v5369_v26 }
0x195c   : > { %5154 = vmatprep.mubr.msk.f32.mxu1 %vm202_vm0, %v6061_v5 }
0x195f   : > { %5155 = vmatmul.mubr.msk.f32.gmra.mxu1 %vm202_vm0, %v6068_v50 }
0x1960   : > { %5175 = vmatprep.mubr.msk.f32.mxu1 %vm5370_vm6, %v5369_v26 }
0x1a1b   : > { %v5153_v48 = vpop.f32.mrf.mxu1 }
0x1a1d   : > { %v3920_v44 = vpop.f32.mrf.mxu1 }
0x1a1e   : > { %5161 = vmatprep.mubr.msk.f32.mxu0 %vm499_vm3, %v3920_v44 }
0x1a1f   : > { %v5156_v16 = vpop.f32.mrf.mxu1  ;;  %5162 = vmatmul.mubr.msk.f32.vlgmr.msra.gmra.mxu0 %vm499_vm3, %v5153_v48 }
0x1a21   : > { %v3930_v51 = vpop.f32.mrf.mxu1 }
0x1a22   : > { %5164 = vmatprep.mubr.msk.f32.mxu0 %vm499_vm3, %v3930_v51 }
0x1a23   : > { %5165 = vmatmul.mubr.msk.f32.gmra.mxu0 %vm499_vm3, %v5156_v16 }
0x1adf   : > { %v5163_v32 = vpop.f32.mrf.mxu0 }
0x1ae0   : > { %v6401_v5 = vadd.f32 %v6214_v62, %v5163_v32 }
0x1ae1   : > { %v4017_v50 = vpop.f32.mrf.mxu0 }
0x1ae2   : > { %v4081_v28 = vsub.f32 0.0, %v6401_v5  ;;  %v6405_v2 = vadd.f32 %v6214_v62, %v4017_v50  ;;  %v4077_v4 = vsub.f32 %v6188_v23, %v6401_v5 }
0x1ae3   : > { %v5166_v0 = vpop.f32.mrf.mxu0 }
0x1ae4   : > { %v4086_v17 = vmul.f32 1.442695, %v4081_v28  ;;  %v4080_v33 = vsub.f32 0.0, %v6405_v2  ;;  %v6409_v46 = vadd.f32 %v6214_v62, %v5166_v0 }
0x1ae5   : > { %v4027_v27 = vpop.f32.mrf.mxu0 }
0x1ae6   : > { %5281 = vpow2.f32 %v4086_v17  ;;  %v4084_v20 = vmul.f32 1.442695, %v4080_v33  ;;  %v4083_v11 = vsub.f32 0.0, %v6409_v46  ;;  %v6413_v36 = vadd.f32 %v6214_v62, %v4027_v27 }
0x1ae7   : > { %v4038_v62 = vmul.f32 %v6341_v8, %v6341_v8  ;;  %v4071_v8 = vmul.f32 0.5, %v4517_v25  ;;  %v4079_v7 = vsub.f32 %v6178_v54, %v6409_v46 }
0x1ae8   : > { %5283 = vpow2.f32 %v4084_v20  ;;  %v4090_v55 = vmul.f32 1.442695, %v4083_v11  ;;  %v4082_v61 = vsub.f32 0.0, %v6413_v36  ;;  %v4078_v51 = vsub.f32 %v6183_v22, %v6413_v36 }
0x1ae9   : > { %v4062_v6 = vadd.f32 %v4053_v59, %v4038_v62  ;;  %v4075_v29 = vsub.f32 %v4071_v8, %v6327_v3  ;;  %v4072_v3 = vsub.f32 %v4068_v60, %v6324_v15 }
0x1aea   : > { %5285 = vpow2.f32 %v4090_v55  ;;  %v4088_v34 = vmul.f32 1.442695, %v4082_v61 }
0x1aeb   : > { %v4516_v39 = vadd.f32 -1.0, %v4062_v6 }
0x1aec   : > { %5287 = vpow2.f32 %v4088_v34 }
0x1aed   : > { %v4070_v18 = vmul.f32 0.5, %v4516_v39 }
0x1aef   : > { %v4074_v35 = vsub.f32 %v4070_v18, %v6332_v47  ;;  %v1227_v47 = vsel %vm304_vm2, %v5801_v9, 0.0 }
0x1af3   : > { %v5282_v57 = vpop.eup %5281 }
0x1af4   : > { %4098 = vrot.lane.b32.xlu0 %v5282_v57, %s5368_s25 }
0x1af5   : > { %v5284_v13 = vpop.eup %5283 }
0x1af6   : > { %4096 = vrot.lane.b32.xlu1 %v5284_v13, %s5368_s25 }
0x1af7   : > { %v5286_v63 = vpop.eup %5285 }
0x1af8   : > { %4102 = vrot.lane.b32.xlu0 %v5286_v63, %s5368_s25 }
0x1af9   : > { %v5288_v40 = vpop.eup %5287 }
0x1afa   : > { %4100 = vrot.lane.b32.xlu1 %v5288_v40, %s5368_s25 }
0x1afc   : > { %4130 = vrot.lane.b32.xlu0 %v6409_v46, %s5368_s25 }
0x1afe   : > { %4128 = vrot.lane.b32.xlu1 %v6413_v36, %s5368_s25 }
0x1b00   : > { %4126 = vrot.lane.b32.xlu0 %v6401_v5, %s5368_s25 }
0x1b02   : > { %4154 = vrot.lane.b32.xlu1 %v4075_v29, %s5368_s25 }
0x1b04   : > { %4124 = vrot.lane.b32.xlu0 %v6405_v2, %s5368_s25 }
0x1b06   : > { %4152 = vrot.lane.b32.xlu1 %v4074_v35, %s5368_s25 }
0x1b08   : > { %4150 = vrot.lane.b32.xlu0 %v4073_v53, %s5368_s25  ;;  %v3232_v53 = vsel %vm304_vm2, %v6299_v49, 0.0 }
0x1b0a   : > { %4148 = vrot.lane.b32.xlu1 %v4072_v3, %s5368_s25 }
0x1b0e   : > { %1231 = vrot.lane.b32.xlu1 %v5801_v9, %s5368_s25  ;;  %v4076_v9 = vsub.f32 %v6194_v56, %v6405_v2 }
0x1b27   : > { %1228 = vadd.xlane.f32.xlu0 %v1227_v47 }
0x1b2b   : > { %2231 = vadd.xlane.f32.xlu0 %v2230_v24 }
0x1b41   : > { %2234 = vrot.lane.b32.xlu0 %v6040_v21, %s5368_s25 }
0x1b66   : > { %v4099_v43 = vpop.permute.xlu0 %4098 }
0x1b67   : > { %v4109_v44 = vmul.f32 %v4099_v43, %v4077_v4 }
0x1b68   : > { %v4097_v15 = vpop.permute.xlu1 %4096 }
0x1b69   : > { %v4108_v50 = vmul.f32 %v4097_v15, %v4076_v9  ;;  %v4113_v17 = vmul.f32 -0.5, %v4109_v44 }
0x1b6a   : > { %v4103_v48 = vpop.permute.xlu0 %4102 }
0x1b6b   : > { %v4111_v16 = vmul.f32 %v4103_v48, %v4079_v7  ;;  %v4112_v27 = vmul.f32 -0.5, %v4108_v50  ;;  %v4117_v56 = vmul.f32 %v4113_v17, %v4109_v44 }
0x1b6c   : > { %v4101_v32 = vpop.permute.xlu1 %4100 }
0x1b6d   : > { %v4115_v21 = vmul.f32 -0.5, %v4111_v16  ;;  %v4110_v28 = vmul.f32 %v4101_v32, %v4078_v51  ;;  %v4116_v36 = vmul.f32 %v4112_v27, %v4108_v50 }
0x1b6e   : > { %v4131_v0 = vpop.permute.xlu0 %4130 }
0x1b6f   : > { %v4114_v33 = vmul.f32 -0.5, %v4110_v28  ;;  %v4119_v23 = vmul.f32 %v4115_v21, %v4111_v16 }
0x1b70   : > { %v4129_v5 = vpop.permute.xlu1 %4128 }
0x1b71   : > { %v4139_v54 = vsub.f32 %v4119_v23, %v4131_v0  ;;  %v4118_v46 = vmul.f32 %v4114_v33, %v4110_v28 }
0x1b72   : > { %v4127_v20 = vpop.permute.xlu0 %4126 }
0x1b73   : > { %v4521_v11 = vadd.f32 -0.9189385, %v4139_v54  ;;  %v4138_v55 = vsub.f32 %v4118_v46, %v4129_v5  ;;  %v4137_v61 = vsub.f32 %v4117_v56, %v4127_v20 }
0x1b74   : > { %v4155_v2 = vpop.permute.xlu1 %4154 }
0x1b75   : > { %v4163_v22 = vsel %vm304_vm2, %v4521_v11, %v4155_v2  ;;  %v4520_v10 = vadd.f32 -0.9189385, %v4138_v55  ;;  %v4519_v59 = vadd.f32 -0.9189385, %v4137_v61 }
0x1b76   : > { %v4125_v34 = vpop.permute.xlu0 %4124  ;;  %5168 = vmatpush3.msra.mxu1 %v4163_v22 }
0x1b77   : > { %v4136_v37 = vsub.f32 %v4116_v36, %v4125_v34  ;;  %5169 = vmatprep.subr.mxu1 %v5369_v26 }
0x1b78   : > { %v4153_v57 = vpop.permute.xlu1 %4152 }
0x1b79   : > { %v4162_v41 = vsel %vm304_vm2, %v4520_v10, %v4153_v57  ;;  %v4518_v62 = vadd.f32 -0.9189385, %v4136_v37 }
0x1b7a   : > { %v4151_v13 = vpop.permute.xlu0 %4150  ;;  %5170 = vmatpush3.msra.mxu1 %v4162_v41 }
0x1b7b   : > { %v4161_v63 = vsel %vm304_vm2, %v4519_v59, %v4151_v13  ;;  %5171 = vmatprep.subr.mxu1 %v5369_v26 }
0x1b7c   : > { %5172 = vmatpush3.msra.mxu1 %v4161_v63  ;;  %v4149_v52 = vpop.permute.xlu1 %4148 }
0x1b7d   : > { %v4160_v25 = vsel %vm304_vm2, %v4518_v62, %v4149_v52  ;;  %5173 = vmatprep.subr.mxu1 %v5369_v26 }
0x1b7e   : > { %5174 = vmatpush3.msra.mxu1 %v4160_v25 }
0x1b7f   : > { %5176 = vmatmul.mubr.msk.f32.vlgmr.msra.gmra.mxu1 %vm202_vm0, %v5785_v42 }
0x1b80   : > { %v1232_v6 = vpop.permute.xlu1 %1231 }
0x1b81   : > { %v1234_v45 = vsel %vm734_vm5, %v1232_v6, 0.0 }
0x1b82   : > { %1235 = vadd.xlane.f32.xlu1 %v1234_v45 }
0x1bb0   : > { %v1229_v40 = vpop.xlane.xlu0 %1228 }
0x1bb1   : > { %v1238_v42 = vsel %vm1237_vm10, %v1229_v40, 0.0 }
0x1bb4   : > { %v2232_v1 = vpop.xlane.xlu0 %2231 }
0x1bb5   : > { %v2240_v18 = vsel %vm1237_vm10, %v2232_v1, 0.0 }
0x1bb8   : > { %v2235_v38 = vpop.permute.xlu0 %2234 }
0x1bb9   : > { %v2237_v12 = vsel %vm734_vm5, %v2235_v38, 0.0 }
0x1bba   : > { %2238 = vadd.xlane.f32.xlu1 %v2237_v12 }
0x1bcb   : > { %3236 = vrot.lane.b32.xlu1 %v6299_v49, %s5368_s25 }
0x1c0b   : > { %v1236_v26 = vpop.xlane.xlu1 %1235 }
0x1c0c   : > { %v1240_v8 = vsel %vm1239_vm11, %v1236_v26, 0.0 }
0x1c0d   : > { %v1241_v39 = vadd.f32 %v1240_v8, %v1238_v42 }
0x1c0f   : > { %1242 = vst [vmem:[%s6482_s7] sm:$0xff] %v1241_v39 }
0x1c3f   : > { %v4230_v14 = vpop.f32.mrf.mxu1 }
0x1c40   : > { %4238 = vrot.lane.b32.xlu0 %v4230_v14, %s5368_s25  ;;  %v4234_v3 = vsel %vm304_vm2, %v4230_v14, 0.0  ;;  %s4263_s25 = sshll.u32 %s6482_s7, 4  ;;  %s6503_s25 = int_to_ptr.vmem [resolvable:$true] %s4263_s25 }
0x1c41   : > { %v5177_v30 = vpop.f32.mrf.mxu1  ;;  %s5303_s8 = scalar_lea.vmem %s6503_s25, 512  ;;  %p5310_p0 = scmp.lt.s32.totalorder %s6503_s25, %s5308_s10 }
0x1c42   : > { %p5304_p11 = scmp.ne.s32.totalorder %s6503_s25, %s5303_s8  ;;  %p5311_p1 = scmp.lt.s32.totalorder %s5309_s11, %s5303_s8 }
0x1c43   : > { %v2239_v29 = vpop.xlane.xlu1 %2238 }
0x1c44   : > { %v2241_v19 = vsel %vm1239_vm11, %v2239_v29, 0.0  ;;  %p5305_p12 = pnand %p5304_p11, %p5432_p5  ;;  %p5312_p2 = por %p5311_p1, %p5310_p0 }
0x1c45   : > { %v2242_v58 = vadd.f32 %v2241_v19, %v2240_v18 }
0x1c46   : > { %p5306_p13 = pneg %p5305_p12 }
0x1c47   : > { %4427 = vst [vmem:[%s6482_s7 + $0x8] sm:$0xff] %v2242_v58  ;;  %v3237_v35 = vpop.permute.xlu1 %3236 }
0x1c48   : > { %v3239_v60 = vsel %vm734_vm5, %v3237_v35, 0.0  ;;  %p5313_p3 = pnand %p5312_p2, %p5306_p13 }
0x1c49   : > { %3240 = vadd.xlane.f32.xlu1 %v3239_v60 }
0x1c5f   : > { %3233 = vadd.xlane.f32.xlu0 %v3232_v53 }
0x1c63   : > { %4235 = vadd.xlane.f32.xlu0 %v4234_v3 }
0x1cb2   : > { %v4239_v47 = vpop.permute.xlu0 %4238 }
0x1cb3   : > { %v4241_v24 = vsel %vm734_vm5, %v4239_v47, 0.0 }
0x1cb4   : > { %4242 = vadd.xlane.f32.xlu0 %v4241_v24 }
0x1cd2   : > { %v3241_v43 = vpop.xlane.xlu1 %3240 }
0x1cd3   : > { %v3243_v4 = vsel %vm1239_vm11, %v3241_v43, 0.0 }
0x1ce8   : > { %v3234_v15 = vpop.xlane.xlu0 %3233 }
0x1ce9   : > { %v3242_v7 = vsel %vm1237_vm10, %v3234_v15, 0.0 }
0x1cea   : > { %v3244_v49 = vadd.f32 %v3243_v4, %v3242_v7 }
0x1cec   : > { %4475 = vst [vmem:[%s6482_s7 + $0x10] sm:$0xff] %v3244_v49  ;;  %v4236_v48 = vpop.xlane.xlu0 %4235 }
0x1ced   : > { %v4244_v9 = vsel %vm1237_vm10, %v4236_v48, 0.0 }
0x1d3d   : > { %v4243_v44 = vpop.xlane.xlu0 %4242 }
0x1d3e   : > { %v4245_v16 = vsel %vm1239_vm11, %v4243_v44, 0.0 }
0x1d3f   : > { %v4246_v51 = vadd.f32 %v4245_v16, %v4244_v9 }
0x1d41   : > { %4523 = vst [vmem:[%s6482_s7 + $0x18] sm:$0xff] %v4246_v51 }
0x1d42   : > { %5316 = shalt.err (!%p5313_p3)
}
0x1d43   : > { %s5317_s17 = scalar_lea.hbm %s6512_s6, 512  ;;  %s5321_s24 = scalar_lea.hbm %s6560_s3, 1024 }
0x1d44   : > { %p5318_p4 = scmp.ne.s32.totalorder %s6512_s6, %s5317_s17  ;;  %p5322_p9 = scmp.lt.s32.totalorder %s6512_s6, %s6560_s3 }
0x1d45   : > { %p5323_p10 = scmp.lt.s32.totalorder %s5321_s24, %s5317_s17 }
0x1d46   : > { %p5319_p7 = pnand %p5318_p4, %p5432_p5 }
0x1d47   : > { %p5324_p11 = por %p5323_p10, %p5322_p9 }
0x1d48   : > { %p5320_p8 = pneg %p5319_p7 }
0x1d4a   : > { %p5325_p12 = pnand %p5324_p11, %p5320_p8 }
0x1d4c   : > { %5328 = shalt.err (!%p5325_p12)
}
0x1d4d   : > { %s5372_s27 = smov 128   ;;  %s5373_s4 = smov 8  }
0x1d4e   : > { %5178 = dma.vmem_to_hbm [thread:$0]  (%p5432_p5), %s6503_s25, 512, %s6512_s6, %s6517_s16, %s5372_s27, %s5372_s27, %s5373_s4  }
0x1d4f PF: > { %p5184_p13 = scmp.ge.s32.totalorder %s5363_s15, 2  ;;  %s4278_s7 = sand.u32 1, %s5351_s12  }
0x1d50   : > { %s4279_s28 = scalar_lea.sflag [#allocation3], %s4278_s7 }
0x1d51   : > { %p5181_p0 = pnand %p5184_p13, %p5436_p6 }
0x1d53   : > { %p5182_p1 = pneg %p5181_p0 }
0x1d55   : > { %5346 = dma.done.wait (%p5182_p1), %s4279_s28, 512  }
0x1d56   : > { %5348 = vsyncadd (%p5182_p1), %s4279_s28, 4294966784  ;;  %p13_p2 = scmp.ge.s32.totalorder %s5419_s18, 4   ;;  %s6567_s12 = smov %s5355_s13 }
0x1d57   : > { %s6568_s13 = smov %s5359_s14  ;;  %s6569_s14 = smov %s5430_s21 }
0x1d58   : > { %s6570_s15 = smov %s5419_s18  ;;  %15 = sbr.rel (!%p13_p2) target bundleno = 3 (0x3), region = 73 }
0x1d5d   :  { %4284 = vsyncpa [#allocation3], 1 }
0x1d5e   :  { %4286 = vsyncpa [#allocation3 + $0x1], 1 }

</bundles_post_ra>
